<compile_context>
chip_gen: v7x
topology: tpu7x:2x2x1
jax: 0.10.0
libtpu: 0.0.40
codegen_flags: <defaults>
</compile_context>

<pallas_src>
import functools

import jax
import jax.numpy as jnp
from jax.experimental import pallas as pl
from jax.experimental.pallas import tpu as pltpu


# ------------------------------ Pallas kernel --------------------------------


def _prior_predictor_kernel(len_ref, x_ref, resw_ref, resb_ref,
                            projw_ref, projb_ref, h_ref, o_ref, pad_scr,
                            *, ksize, dilation_rate, n_layers, pad_max):
    """One batch element: masked residual dilated-conv stack + 1x1 projection.

    len_ref : (B,) int32 in SMEM (scalar prefetch)
    x_ref   : (1, T, Cin)  VMEM block
    resw_ref: (L, ksize, Cin, Cin), resb_ref: (L, 1, Cin)
    projw_ref: (Cin, Cout), projb_ref: (1, Cout)
    h_ref   : (1, T, Cin)  output (ResStack hidden)
    o_ref   : (1, T, Cout) output (projection)
    pad_scr : (T + 2*pad_max, Cin) VMEM scratch (zero-haloed activation slab)
    """
    b = pl.program_id(0)
    T = x_ref.shape[1]
    C = x_ref.shape[2]

    # valid-position mask built in-kernel from the sequence length (SMEM scalar)
    length = len_ref[b]
    row = jax.lax.broadcasted_iota(jnp.int32, (T, 1), 0)
    mask = (row < length).astype(jnp.float32)            # (T, 1), broadcasts over lanes

    # Zero the halo bands once; the central window is rewritten every layer so
    # the bands stay zero for the whole stack.
    if pad_max > 0:
        pad_scr[0:pad_max, :] = jnp.zeros((pad_max, C), jnp.float32)
        pad_scr[pad_max + T:pad_max + T + pad_max, :] = jnp.zeros((pad_max, C),
                                                                  jnp.float32)

    h = x_ref[0] * mask                                   # (T, C)

    # TODO(synk): ResStack source is not part of the reference; canonical masked
    # residual dilated Conv1d stack with leaky-ReLU (slope 0.1) is used.
    for l in range(n_layers):
        dil = dilation_rate ** l
        pad = (ksize - 1) * dil // 2                      # 'same' padding (odd ksize)
        pad_scr[pad_max:pad_max + T, :] = h               # refresh central window
        y = resb_ref[l]                                   # (1, C), broadcasts
        for k in range(ksize):
            start = pad_max - pad + k * dil               # static offset into the slab
            tap = pad_scr[start:start + T, :]             # (T, C)
            y = y + jnp.dot(tap, resw_ref[l, k],
                            preferred_element_type=jnp.float32)
        y = jnp.where(y > 0.0, y, 0.1 * y)                # leaky ReLU
        h = (h + y) * mask

    h_ref[0] = h
    o = jnp.dot(h, projw_ref[...], preferred_element_type=jnp.float32) + projb_ref[...]
    o_ref[0] = o * mask


def prior_predictor_forward(params, x, x_lengths):
    """x: (B, T, Cin) channels-last; returns (hidden (B,T,Cin), proj (B,T,Cout))."""
    B, T, Cin = x.shape
    res_w = params["res_w"]            # (L, ksize, Cin, Cin)
    res_b = params["res_b"]            # (L, 1, Cin)
    proj_w = params["proj_w"]          # (Cin, Cout)
    proj_b = params["proj_b"]          # (1, Cout)
    Cout = proj_w.shape[-1]
    n_layers = res_w.shape[0]
    ksize = params["kernel_size"]
    dr = params["dilation_rate"]
    pad_max = (ksize - 1) * (dr ** max(n_layers - 1, 0)) // 2

    kernel = functools.partial(
        _prior_predictor_kernel,
        ksize=ksize,
        dilation_rate=dr,
        n_layers=n_layers,
        pad_max=pad_max,
    )

    grid_spec = pltpu.PrefetchScalarGridSpec(
        num_scalar_prefetch=1,          # x_lengths -> SMEM, readable in-kernel
        grid=(B,),
        in_specs=[
            pl.BlockSpec((1, T, Cin), lambda b, lens: (b, 0, 0)),
            pl.BlockSpec(res_w.shape, lambda b, lens: (0, 0, 0, 0)),
            pl.BlockSpec(res_b.shape, lambda b, lens: (0, 0, 0)),
            pl.BlockSpec(proj_w.shape, lambda b, lens: (0, 0)),
            pl.BlockSpec(proj_b.shape, lambda b, lens: (0, 0)),
        ],
        out_specs=(
            pl.BlockSpec((1, T, Cin), lambda b, lens: (b, 0, 0)),
            pl.BlockSpec((1, T, Cout), lambda b, lens: (b, 0, 0)),
        ),
        scratch_shapes=[pltpu.VMEM((T + 2 * pad_max, Cin), jnp.float32)],
    )

    h, o = pl.pallas_call(
        kernel,
        out_shape=(jax.ShapeDtypeStruct((B, T, Cin), jnp.float32),
                   jax.ShapeDtypeStruct((B, T, Cout), jnp.float32)),
        grid_spec=grid_spec,
        compiler_params=pltpu.CompilerParams(
            dimension_semantics=("parallel",)),   # B grid steps -> both TCs on v7x
    )(x_lengths.astype(jnp.int32), x.astype(jnp.float32),
      res_w.astype(jnp.float32), res_b.astype(jnp.float32),
      proj_w.astype(jnp.float32), proj_b.astype(jnp.float32))
    return h, o


# --------------------------- parameters & reference --------------------------


def build_params(key, in_channels, out_channels, kernel_size=5,
                 dilation_rate=1, n_layers=4):
    keys = jax.random.split(key, 2 * n_layers + 2)
    res_w = jnp.stack([
        0.05 * jax.random.normal(keys[l],
                                 (kernel_size, in_channels, in_channels),
                                 jnp.float32)
        for l in range(n_layers)])
    res_b = jnp.stack([
        0.05 * jax.random.normal(keys[n_layers + l], (1, in_channels), jnp.float32)
        for l in range(n_layers)])
    proj_w = 0.05 * jax.random.normal(keys[-2], (in_channels, out_channels), jnp.float32)
    proj_b = 0.05 * jax.random.normal(keys[-1], (1, out_channels), jnp.float32)
    return dict(kernel_size=kernel_size, dilation_rate=dilation_rate,
                res_w=res_w, res_b=res_b, proj_w=proj_w, proj_b=proj_b)


def prior_predictor_reference(params, x, x_lengths):
    """Pure-JAX reference with identical math (for a numerical sanity check)."""
    B, T, C = x.shape
    ksize = params["kernel_size"]
    dr = params["dilation_rate"]
    n_layers = params["res_w"].shape[0]
    mask = (jnp.arange(T)[None, :, None] < x_lengths[:, None, None]).astype(jnp.float32)
    h = x * mask
    for l in range(n_layers):
        dil = dr ** l
        pad = (ksize - 1) * dil // 2
        hp = jnp.pad(h, ((0, 0), (pad, pad), (0, 0)))
        y = params["res_b"][l]
        for k in range(ksize):
            y = y + jnp.einsum("btc,cd->btd",
                               hp[:, k * dil:k * dil + T, :], params["res_w"][l, k])
        y = jnp.where(y > 0.0, y, 0.1 * y)
        h = (h + y) * mask
    o = (jnp.einsum("btc,cd->btd", h, params["proj_w"]) + params["proj_b"]) * mask
    return h, o


# ----------------------------------- main ------------------------------------

if __name__ == "__main__":
    key = jax.random.PRNGKey(0)
    kx, kp = jax.random.split(key)

    B, T = 2, 16
    C_IN, C_OUT = 128, 256
    x = jax.random.normal(kx, (B, T, C_IN), jnp.float32)
    x_lengths = jnp.array([16, 11], jnp.int32)

    params = build_params(kp, C_IN, C_OUT, kernel_size=5, dilation_rate=1, n_layers=4)

    h, o = prior_predictor_forward(params, x, x_lengths)
    jax.block_until_ready((h, o))

    assert h.shape == (B, T, C_IN)
    assert o.shape == (B, T, C_OUT)

    with jax.default_matmul_precision("highest"):
        h_ref, o_ref = prior_predictor_reference(params, x, x_lengths)
    assert jnp.allclose(h, h_ref, atol=5e-3, rtol=5e-3)
    assert jnp.allclose(o, o_ref, atol=5e-3, rtol=5e-3)

    print("KERNEL_OK")
</pallas_src>

<mosaic_0001>
module attributes {stable_mosaic.version = 11 : i64} {
  func.func @_prior_predictor_kernel(%arg0: i32, %arg1: memref<2xi32, #tpu.memory_space<smem>>, %arg2: memref<1x16x128xf32, #tpu.memory_space<vmem>>, %arg3: memref<4x5x128x128xf32, #tpu.memory_space<vmem>>, %arg4: memref<4x1x128xf32, #tpu.memory_space<vmem>>, %arg5: memref<128x256xf32, #tpu.memory_space<vmem>>, %arg6: memref<1x256xf32, #tpu.memory_space<vmem>>, %arg7: memref<1x16x128xf32, #tpu.memory_space<vmem>>, %arg8: memref<1x16x256xf32, #tpu.memory_space<vmem>>, %arg9: memref<20x128xf32, #tpu.memory_space<vmem>>) attributes {dimension_semantics = [#tpu.dimension_semantics<parallel>], iteration_bounds = array<i64: 2>, scalar_prefetch = 1 : i64, scratch_operands = 1 : i64, tpu.core_type = #tpu.core_type<tc>, window_params = [{transform_indices = @transform_0, window_bounds = array<i64: 1, 16, 128>}, {pipeline_mode = #tpu.pipeline_mode<synchronous>, transform_indices = @transform_1, window_bounds = array<i64: 4, 5, 128, 128>}, {pipeline_mode = #tpu.pipeline_mode<synchronous>, transform_indices = @transform_2, window_bounds = array<i64: 4, 1, 128>}, {pipeline_mode = #tpu.pipeline_mode<synchronous>, transform_indices = @transform_3, window_bounds = array<i64: 128, 256>}, {pipeline_mode = #tpu.pipeline_mode<synchronous>, transform_indices = @transform_4, window_bounds = array<i64: 1, 256>}, {transform_indices = @transform_5, window_bounds = array<i64: 1, 16, 128>}, {transform_indices = @transform_6, window_bounds = array<i64: 1, 16, 256>}]} {
    %0 = arith.index_cast %arg0 : i32 to index
    %1 = memref.load %arg1[%0] : memref<2xi32, #tpu.memory_space<smem>>
    %2 = tpu.iota {dimensions = array<i32: 0>} : vector<16x1xi32>
    %3 = vector.broadcast %1 : i32 to vector<16x1xi32>
    %4 = arith.cmpi slt, %2, %3 : vector<16x1xi32>
    %5 = arith.extui %4 : vector<16x1xi1> to vector<16x1xi32>
    %6 = arith.sitofp %5 : vector<16x1xi32> to vector<16x1xf32>
    %cst = arith.constant 0.000000e+00 : f32
    %7 = vector.broadcast %cst : f32 to vector<2x128xf32>
    %c0 = arith.constant 0 : index
    %c0_0 = arith.constant 0 : index
    %8 = vector.load %arg9[%c0, %c0_0] : memref<20x128xf32, #tpu.memory_space<vmem>>, vector<2x128xf32>
    tpu.vector_store %arg9[%c0, %c0_0], %7 {strides = array<i32>} : memref<20x128xf32, #tpu.memory_space<vmem>>, vector<2x128xf32>,
    %cst_1 = arith.constant 0.000000e+00 : f32
    %9 = vector.broadcast %cst_1 : f32 to vector<2x128xf32>
    %c18 = arith.constant 18 : index
    %c0_2 = arith.constant 0 : index
    %10 = vector.load %arg9[%c18, %c0_2] : memref<20x128xf32, #tpu.memory_space<vmem>>, vector<2x128xf32>
    tpu.vector_store %arg9[%c18, %c0_2], %9 {strides = array<i32>} : memref<20x128xf32, #tpu.memory_space<vmem>>, vector<2x128xf32>,
    %c0_3 = arith.constant 0 : index
    %c0_4 = arith.constant 0 : index
    %c0_5 = arith.constant 0 : index
    %11 = vector.load %arg2[%c0_3, %c0_4, %c0_5] : memref<1x16x128xf32, #tpu.memory_space<vmem>>, vector<1x16x128xf32>
    %12 = vector.shape_cast %11 : vector<1x16x128xf32> to vector<16x128xf32>
    %13 = vector.broadcast %6 : vector<16x1xf32> to vector<16x128xf32>
    %14 = arith.mulf %12, %13 : vector<16x128xf32>
    %c2 = arith.constant 2 : index
    %c0_6 = arith.constant 0 : index
    %15 = vector.load %arg9[%c2, %c0_6] : memref<20x128xf32, #tpu.memory_space<vmem>>, vector<16x128xf32>
    tpu.vector_store %arg9[%c2, %c0_6], %14 {strides = array<i32>} : memref<20x128xf32, #tpu.memory_space<vmem>>, vector<16x128xf32>,
    %c0_7 = arith.constant 0 : index
    %c0_8 = arith.constant 0 : index
    %c0_9 = arith.constant 0 : index
    %16 = vector.load %arg4[%c0_7, %c0_8, %c0_9] : memref<4x1x128xf32, #tpu.memory_space<vmem>>, vector<1x1x128xf32>
    %17 = vector.shape_cast %16 : vector<1x1x128xf32> to vector<1x128xf32>
    %c0_10 = arith.constant 0 : index
    %c0_11 = arith.constant 0 : index
    %18 = vector.load %arg9[%c0_10, %c0_11] : memref<20x128xf32, #tpu.memory_space<vmem>>, vector<16x128xf32>
    %c0_12 = arith.constant 0 : index
    %c0_13 = arith.constant 0 : index
    %c0_14 = arith.constant 0 : index
    %c0_15 = arith.constant 0 : index
    %19 = vector.load %arg3[%c0_12, %c0_13, %c0_14, %c0_15] : memref<4x5x128x128xf32, #tpu.memory_space<vmem>>, vector<1x1x128x128xf32>
    %20 = vector.shape_cast %19 : vector<1x1x128x128xf32> to vector<128x128xf32>
    %cst_16 = arith.constant dense<0.000000e+00> : vector<16x128xf32>
    %21 = tpu.matmul %18, %20, %cst_16 {dimension_numbers = #tpu.dot_dimension_numbers<[1], [0], [0], [1], [0, 0, 1, 1], [], []>} : vector<16x128xf32>, vector<128x128xf32>, vector<16x128xf32> -> vector<16x128xf32>
    %22 = vector.broadcast %17 : vector<1x128xf32> to vector<16x128xf32>
    %23 = arith.addf %22, %21 : vector<16x128xf32>
    %c1 = arith.constant 1 : index
    %c0_17 = arith.constant 0 : index
    %24 = vector.load %arg9[%c1, %c0_17] : memref<20x128xf32, #tpu.memory_space<vmem>>, vector<16x128xf32>
    %c0_18 = arith.constant 0 : index
    %c1_19 = arith.constant 1 : index
    %c0_20 = arith.constant 0 : index
    %c0_21 = arith.constant 0 : index
    %25 = vector.load %arg3[%c0_18, %c1_19, %c0_20, %c0_21] : memref<4x5x128x128xf32, #tpu.memory_space<vmem>>, vector<1x1x128x128xf32>
    %26 = vector.shape_cast %25 : vector<1x1x128x128xf32> to vector<128x128xf32>
    %cst_22 = arith.constant dense<0.000000e+00> : vector<16x128xf32>
    %27 = tpu.matmul %24, %26, %cst_22 {dimension_numbers = #tpu.dot_dimension_numbers<[1], [0], [0], [1], [0, 0, 1, 1], [], []>} : vector<16x128xf32>, vector<128x128xf32>, vector<16x128xf32> -> vector<16x128xf32>
    %28 = arith.addf %23, %27 : vector<16x128xf32>
    %c2_23 = arith.constant 2 : index
    %c0_24 = arith.constant 0 : index
    %29 = vector.load %arg9[%c2_23, %c0_24] : memref<20x128xf32, #tpu.memory_space<vmem>>, vector<16x128xf32>
    %c0_25 = arith.constant 0 : index
    %c2_26 = arith.constant 2 : index
    %c0_27 = arith.constant 0 : index
    %c0_28 = arith.constant 0 : index
    %30 = vector.load %arg3[%c0_25, %c2_26, %c0_27, %c0_28] : memref<4x5x128x128xf32, #tpu.memory_space<vmem>>, vector<1x1x128x128xf32>
    %31 = vector.shape_cast %30 : vector<1x1x128x128xf32> to vector<128x128xf32>
    %cst_29 = arith.constant dense<0.000000e+00> : vector<16x128xf32>
    %32 = tpu.matmul %29, %31, %cst_29 {dimension_numbers = #tpu.dot_dimension_numbers<[1], [0], [0], [1], [0, 0, 1, 1], [], []>} : vector<16x128xf32>, vector<128x128xf32>, vector<16x128xf32> -> vector<16x128xf32>
    %33 = arith.addf %28, %32 : vector<16x128xf32>
    %c3 = arith.constant 3 : index
    %c0_30 = arith.constant 0 : index
    %34 = vector.load %arg9[%c3, %c0_30] : memref<20x128xf32, #tpu.memory_space<vmem>>, vector<16x128xf32>
    %c0_31 = arith.constant 0 : index
    %c3_32 = arith.constant 3 : index
    %c0_33 = arith.constant 0 : index
    %c0_34 = arith.constant 0 : index
    %35 = vector.load %arg3[%c0_31, %c3_32, %c0_33, %c0_34] : memref<4x5x128x128xf32, #tpu.memory_space<vmem>>, vector<1x1x128x128xf32>
    %36 = vector.shape_cast %35 : vector<1x1x128x128xf32> to vector<128x128xf32>
    %cst_35 = arith.constant dense<0.000000e+00> : vector<16x128xf32>
    %37 = tpu.matmul %34, %36, %cst_35 {dimension_numbers = #tpu.dot_dimension_numbers<[1], [0], [0], [1], [0, 0, 1, 1], [], []>} : vector<16x128xf32>, vector<128x128xf32>, vector<16x128xf32> -> vector<16x128xf32>
    %38 = arith.addf %33, %37 : vector<16x128xf32>
    %c4 = arith.constant 4 : index
    %c0_36 = arith.constant 0 : index
    %39 = vector.load %arg9[%c4, %c0_36] : memref<20x128xf32, #tpu.memory_space<vmem>>, vector<16x128xf32>
    %c0_37 = arith.constant 0 : index
    %c4_38 = arith.constant 4 : index
    %c0_39 = arith.constant 0 : index
    %c0_40 = arith.constant 0 : index
    %40 = vector.load %arg3[%c0_37, %c4_38, %c0_39, %c0_40] : memref<4x5x128x128xf32, #tpu.memory_space<vmem>>, vector<1x1x128x128xf32>
    %41 = vector.shape_cast %40 : vector<1x1x128x128xf32> to vector<128x128xf32>
    %cst_41 = arith.constant dense<0.000000e+00> : vector<16x128xf32>
    %42 = tpu.matmul %39, %41, %cst_41 {dimension_numbers = #tpu.dot_dimension_numbers<[1], [0], [0], [1], [0, 0, 1, 1], [], []>} : vector<16x128xf32>, vector<128x128xf32>, vector<16x128xf32> -> vector<16x128xf32>
    %43 = arith.addf %38, %42 : vector<16x128xf32>
    %cst_42 = arith.constant 0.000000e+00 : f32
    %44 = vector.broadcast %cst_42 : f32 to vector<16x128xf32>
    %45 = arith.cmpf ogt, %43, %44 : vector<16x128xf32>
    %cst_43 = arith.constant 1.000000e-01 : f32
    %46 = vector.broadcast %cst_43 : f32 to vector<16x128xf32>
    %47 = arith.mulf %46, %43 : vector<16x128xf32>
    %48 = arith.select %45, %43, %47 : vector<16x128xi1>, vector<16x128xf32>
    %49 = arith.addf %14, %48 : vector<16x128xf32>
    %50 = vector.broadcast %6 : vector<16x1xf32> to vector<16x128xf32>
    %51 = arith.mulf %49, %50 : vector<16x128xf32>
    %c2_44 = arith.constant 2 : index
    %c0_45 = arith.constant 0 : index
    %52 = vector.load %arg9[%c2_44, %c0_45] : memref<20x128xf32, #tpu.memory_space<vmem>>, vector<16x128xf32>
    tpu.vector_store %arg9[%c2_44, %c0_45], %51 {strides = array<i32>} : memref<20x128xf32, #tpu.memory_space<vmem>>, vector<16x128xf32>,
    %c1_46 = arith.constant 1 : index
    %c0_47 = arith.constant 0 : index
    %c0_48 = arith.constant 0 : index
    %53 = vector.load %arg4[%c1_46, %c0_47, %c0_48] : memref<4x1x128xf32, #tpu.memory_space<vmem>>, vector<1x1x128xf32>
    %54 = vector.shape_cast %53 : vector<1x1x128xf32> to vector<1x128xf32>
    %c0_49 = arith.constant 0 : index
    %c0_50 = arith.constant 0 : index
    %55 = vector.load %arg9[%c0_49, %c0_50] : memref<20x128xf32, #tpu.memory_space<vmem>>, vector<16x128xf32>
    %c1_51 = arith.constant 1 : index
    %c0_52 = arith.constant 0 : index
    %c0_53 = arith.constant 0 : index
    %c0_54 = arith.constant 0 : index
    %56 = vector.load %arg3[%c1_51, %c0_52, %c0_53, %c0_54] : memref<4x5x128x128xf32, #tpu.memory_space<vmem>>, vector<1x1x128x128xf32>
    %57 = vector.shape_cast %56 : vector<1x1x128x128xf32> to vector<128x128xf32>
    %cst_55 = arith.constant dense<0.000000e+00> : vector<16x128xf32>
    %58 = tpu.matmul %55, %57, %cst_55 {dimension_numbers = #tpu.dot_dimension_numbers<[1], [0], [0], [1], [0, 0, 1, 1], [], []>} : vector<16x128xf32>, vector<128x128xf32>, vector<16x128xf32> -> vector<16x128xf32>
    %59 = vector.broadcast %54 : vector<1x128xf32> to vector<16x128xf32>
    %60 = arith.addf %59, %58 : vector<16x128xf32>
    %c1_56 = arith.constant 1 : index
    %c0_57 = arith.constant 0 : index
    %61 = vector.load %arg9[%c1_56, %c0_57] : memref<20x128xf32, #tpu.memory_space<vmem>>, vector<16x128xf32>
    %c1_58 = arith.constant 1 : index
    %c1_59 = arith.constant 1 : index
    %c0_60 = arith.constant 0 : index
    %c0_61 = arith.constant 0 : index
    %62 = vector.load %arg3[%c1_58, %c1_59, %c0_60, %c0_61] : memref<4x5x128x128xf32, #tpu.memory_space<vmem>>, vector<1x1x128x128xf32>
    %63 = vector.shape_cast %62 : vector<1x1x128x128xf32> to vector<128x128xf32>
    %cst_62 = arith.constant dense<0.000000e+00> : vector<16x128xf32>
    %64 = tpu.matmul %61, %63, %cst_62 {dimension_numbers = #tpu.dot_dimension_numbers<[1], [0], [0], [1], [0, 0, 1, 1], [], []>} : vector<16x128xf32>, vector<128x128xf32>, vector<16x128xf32> -> vector<16x128xf32>
    %65 = arith.addf %60, %64 : vector<16x128xf32>
    %c2_63 = arith.constant 2 : index
    %c0_64 = arith.constant 0 : index
    %66 = vector.load %arg9[%c2_63, %c0_64] : memref<20x128xf32, #tpu.memory_space<vmem>>, vector<16x128xf32>
    %c1_65 = arith.constant 1 : index
    %c2_66 = arith.constant 2 : index
    %c0_67 = arith.constant 0 : index
    %c0_68 = arith.constant 0 : index
    %67 = vector.load %arg3[%c1_65, %c2_66, %c0_67, %c0_68] : memref<4x5x128x128xf32, #tpu.memory_space<vmem>>, vector<1x1x128x128xf32>
    %68 = vector.shape_cast %67 : vector<1x1x128x128xf32> to vector<128x128xf32>
    %cst_69 = arith.constant dense<0.000000e+00> : vector<16x128xf32>
    %69 = tpu.matmul %66, %68, %cst_69 {dimension_numbers = #tpu.dot_dimension_numbers<[1], [0], [0], [1], [0, 0, 1, 1], [], []>} : vector<16x128xf32>, vector<128x128xf32>, vector<16x128xf32> -> vector<16x128xf32>
    %70 = arith.addf %65, %69 : vector<16x128xf32>
    %c3_70 = arith.constant 3 : index
    %c0_71 = arith.constant 0 : index
    %71 = vector.load %arg9[%c3_70, %c0_71] : memref<20x128xf32, #tpu.memory_space<vmem>>, vector<16x128xf32>
    %c1_72 = arith.constant 1 : index
    %c3_73 = arith.constant 3 : index
    %c0_74 = arith.constant 0 : index
    %c0_75 = arith.constant 0 : index
    %72 = vector.load %arg3[%c1_72, %c3_73, %c0_74, %c0_75] : memref<4x5x128x128xf32, #tpu.memory_space<vmem>>, vector<1x1x128x128xf32>
    %73 = vector.shape_cast %72 : vector<1x1x128x128xf32> to vector<128x128xf32>
    %cst_76 = arith.constant dense<0.000000e+00> : vector<16x128xf32>
    %74 = tpu.matmul %71, %73, %cst_76 {dimension_numbers = #tpu.dot_dimension_numbers<[1], [0], [0], [1], [0, 0, 1, 1], [], []>} : vector<16x128xf32>, vector<128x128xf32>, vector<16x128xf32> -> vector<16x128xf32>
    %75 = arith.addf %70, %74 : vector<16x128xf32>
    %c4_77 = arith.constant 4 : index
    %c0_78 = arith.constant 0 : index
    %76 = vector.load %arg9[%c4_77, %c0_78] : memref<20x128xf32, #tpu.memory_space<vmem>>, vector<16x128xf32>
    %c1_79 = arith.constant 1 : index
    %c4_80 = arith.constant 4 : index
    %c0_81 = arith.constant 0 : index
    %c0_82 = arith.constant 0 : index
    %77 = vector.load %arg3[%c1_79, %c4_80, %c0_81, %c0_82] : memref<4x5x128x128xf32, #tpu.memory_space<vmem>>, vector<1x1x128x128xf32>
    %78 = vector.shape_cast %77 : vector<1x1x128x128xf32> to vector<128x128xf32>
    %cst_83 = arith.constant dense<0.000000e+00> : vector<16x128xf32>
    %79 = tpu.matmul %76, %78, %cst_83 {dimension_numbers = #tpu.dot_dimension_numbers<[1], [0], [0], [1], [0, 0, 1, 1], [], []>} : vector<16x128xf32>, vector<128x128xf32>, vector<16x128xf32> -> vector<16x128xf32>
    %80 = arith.addf %75, %79 : vector<16x128xf32>
    %cst_84 = arith.constant 0.000000e+00 : f32
    %81 = vector.broadcast %cst_84 : f32 to vector<16x128xf32>
    %82 = arith.cmpf ogt, %80, %81 : vector<16x128xf32>
    %cst_85 = arith.constant 1.000000e-01 : f32
    %83 = vector.broadcast %cst_85 : f32 to vector<16x128xf32>
    %84 = arith.mulf %83, %80 : vector<16x128xf32>
    %85 = arith.select %82, %80, %84 : vector<16x128xi1>, vector<16x128xf32>
    %86 = arith.addf %51, %85 : vector<16x128xf32>
    %87 = vector.broadcast %6 : vector<16x1xf32> to vector<16x128xf32>
    %88 = arith.mulf %86, %87 : vector<16x128xf32>
    %c2_86 = arith.constant 2 : index
    %c0_87 = arith.constant 0 : index
    %89 = vector.load %arg9[%c2_86, %c0_87] : memref<20x128xf32, #tpu.memory_space<vmem>>, vector<16x128xf32>
    tpu.vector_store %arg9[%c2_86, %c0_87], %88 {strides = array<i32>} : memref<20x128xf32, #tpu.memory_space<vmem>>, vector<16x128xf32>,
    %c2_88 = arith.constant 2 : index
    %c0_89 = arith.constant 0 : index
    %c0_90 = arith.constant 0 : index
    %90 = vector.load %arg4[%c2_88, %c0_89, %c0_90] : memref<4x1x128xf32, #tpu.memory_space<vmem>>, vector<1x1x128xf32>
    %91 = vector.shape_cast %90 : vector<1x1x128xf32> to vector<1x128xf32>
    %c0_91 = arith.constant 0 : index
    %c0_92 = arith.constant 0 : index
    %92 = vector.load %arg9[%c0_91, %c0_92] : memref<20x128xf32, #tpu.memory_space<vmem>>, vector<16x128xf32>
    %c2_93 = arith.constant 2 : index
    %c0_94 = arith.constant 0 : index
    %c0_95 = arith.constant 0 : index
    %c0_96 = arith.constant 0 : index
    %93 = vector.load %arg3[%c2_93, %c0_94, %c0_95, %c0_96] : memref<4x5x128x128xf32, #tpu.memory_space<vmem>>, vector<1x1x128x128xf32>
    %94 = vector.shape_cast %93 : vector<1x1x128x128xf32> to vector<128x128xf32>
    %cst_97 = arith.constant dense<0.000000e+00> : vector<16x128xf32>
    %95 = tpu.matmul %92, %94, %cst_97 {dimension_numbers = #tpu.dot_dimension_numbers<[1], [0], [0], [1], [0, 0, 1, 1], [], []>} : vector<16x128xf32>, vector<128x128xf32>, vector<16x128xf32> -> vector<16x128xf32>
    %96 = vector.broadcast %91 : vector<1x128xf32> to vector<16x128xf32>
    %97 = arith.addf %96, %95 : vector<16x128xf32>
    %c1_98 = arith.constant 1 : index
    %c0_99 = arith.constant 0 : index
    %98 = vector.load %arg9[%c1_98, %c0_99] : memref<20x128xf32, #tpu.memory_space<vmem>>, vector<16x128xf32>
    %c2_100 = arith.constant 2 : index
    %c1_101 = arith.constant 1 : index
    %c0_102 = arith.constant 0 : index
    %c0_103 = arith.constant 0 : index
    %99 = vector.load %arg3[%c2_100, %c1_101, %c0_102, %c0_103] : memref<4x5x128x128xf32, #tpu.memory_space<vmem>>, vector<1x1x128x128xf32>
    %100 = vector.shape_cast %99 : vector<1x1x128x128xf32> to vector<128x128xf32>
    %cst_104 = arith.constant dense<0.000000e+00> : vector<16x128xf32>
    %101 = tpu.matmul %98, %100, %cst_104 {dimension_numbers = #tpu.dot_dimension_numbers<[1], [0], [0], [1], [0, 0, 1, 1], [], []>} : vector<16x128xf32>, vector<128x128xf32>, vector<16x128xf32> -> vector<16x128xf32>
    %102 = arith.addf %97, %101 : vector<16x128xf32>
    %c2_105 = arith.constant 2 : index
    %c0_106 = arith.constant 0 : index
    %103 = vector.load %arg9[%c2_105, %c0_106] : memref<20x128xf32, #tpu.memory_space<vmem>>, vector<16x128xf32>
    %c2_107 = arith.constant 2 : index
    %c2_108 = arith.constant 2 : index
    %c0_109 = arith.constant 0 : index
    %c0_110 = arith.constant 0 : index
    %104 = vector.load %arg3[%c2_107, %c2_108, %c0_109, %c0_110] : memref<4x5x128x128xf32, #tpu.memory_space<vmem>>, vector<1x1x128x128xf32>
    %105 = vector.shape_cast %104 : vector<1x1x128x128xf32> to vector<128x128xf32>
    %cst_111 = arith.constant dense<0.000000e+00> : vector<16x128xf32>
    %106 = tpu.matmul %103, %105, %cst_111 {dimension_numbers = #tpu.dot_dimension_numbers<[1], [0], [0], [1], [0, 0, 1, 1], [], []>} : vector<16x128xf32>, vector<128x128xf32>, vector<16x128xf32> -> vector<16x128xf32>
    %107 = arith.addf %102, %106 : vector<16x128xf32>
    %c3_112 = arith.constant 3 : index
    %c0_113 = arith.constant 0 : index
    %108 = vector.load %arg9[%c3_112, %c0_113] : memref<20x128xf32, #tpu.memory_space<vmem>>, vector<16x128xf32>
    %c2_114 = arith.constant 2 : index
    %c3_115 = arith.constant 3 : index
    %c0_116 = arith.constant 0 : index
    %c0_117 = arith.constant 0 : index
    %109 = vector.load %arg3[%c2_114, %c3_115, %c0_116, %c0_117] : memref<4x5x128x128xf32, #tpu.memory_space<vmem>>, vector<1x1x128x128xf32>
    %110 = vector.shape_cast %109 : vector<1x1x128x128xf32> to vector<128x128xf32>
    %cst_118 = arith.constant dense<0.000000e+00> : vector<16x128xf32>
    %111 = tpu.matmul %108, %110, %cst_118 {dimension_numbers = #tpu.dot_dimension_numbers<[1], [0], [0], [1], [0, 0, 1, 1], [], []>} : vector<16x128xf32>, vector<128x128xf32>, vector<16x128xf32> -> vector<16x128xf32>
    %112 = arith.addf %107, %111 : vector<16x128xf32>
    %c4_119 = arith.constant 4 : index
    %c0_120 = arith.constant 0 : index
    %113 = vector.load %arg9[%c4_119, %c0_120] : memref<20x128xf32, #tpu.memory_space<vmem>>, vector<16x128xf32>
    %c2_121 = arith.constant 2 : index
    %c4_122 = arith.constant 4 : index
    %c0_123 = arith.constant 0 : index
    %c0_124 = arith.constant 0 : index
    %114 = vector.load %arg3[%c2_121, %c4_122, %c0_123, %c0_124] : memref<4x5x128x128xf32, #tpu.memory_space<vmem>>, vector<1x1x128x128xf32>
    %115 = vector.shape_cast %114 : vector<1x1x128x128xf32> to vector<128x128xf32>
    %cst_125 = arith.constant dense<0.000000e+00> : vector<16x128xf32>
    %116 = tpu.matmul %113, %115, %cst_125 {dimension_numbers = #tpu.dot_dimension_numbers<[1], [0], [0], [1], [0, 0, 1, 1], [], []>} : vector<16x128xf32>, vector<128x128xf32>, vector<16x128xf32> -> vector<16x128xf32>
    %117 = arith.addf %112, %116 : vector<16x128xf32>
    %cst_126 = arith.constant 0.000000e+00 : f32
    %118 = vector.broadcast %cst_126 : f32 to vector<16x128xf32>
    %119 = arith.cmpf ogt, %117, %118 : vector<16x128xf32>
    %cst_127 = arith.constant 1.000000e-01 : f32
    %120 = vector.broadcast %cst_127 : f32 to vector<16x128xf32>
    %121 = arith.mulf %120, %117 : vector<16x128xf32>
    %122 = arith.select %119, %117, %121 : vector<16x128xi1>, vector<16x128xf32>
    %123 = arith.addf %88, %122 : vector<16x128xf32>
    %124 = vector.broadcast %6 : vector<16x1xf32> to vector<16x128xf32>
    %125 = arith.mulf %123, %124 : vector<16x128xf32>
    %c2_128 = arith.constant 2 : index
    %c0_129 = arith.constant 0 : index
    %126 = vector.load %arg9[%c2_128, %c0_129] : memref<20x128xf32, #tpu.memory_space<vmem>>, vector<16x128xf32>
    tpu.vector_store %arg9[%c2_128, %c0_129], %125 {strides = array<i32>} : memref<20x128xf32, #tpu.memory_space<vmem>>, vector<16x128xf32>,
    %c3_130 = arith.constant 3 : index
    %c0_131 = arith.constant 0 : index
    %c0_132 = arith.constant 0 : index
    %127 = vector.load %arg4[%c3_130, %c0_131, %c0_132] : memref<4x1x128xf32, #tpu.memory_space<vmem>>, vector<1x1x128xf32>
    %128 = vector.shape_cast %127 : vector<1x1x128xf32> to vector<1x128xf32>
    %c0_133 = arith.constant 0 : index
    %c0_134 = arith.constant 0 : index
    %129 = vector.load %arg9[%c0_133, %c0_134] : memref<20x128xf32, #tpu.memory_space<vmem>>, vector<16x128xf32>
    %c3_135 = arith.constant 3 : index
    %c0_136 = arith.constant 0 : index
    %c0_137 = arith.constant 0 : index
    %c0_138 = arith.constant 0 : index
    %130 = vector.load %arg3[%c3_135, %c0_136, %c0_137, %c0_138] : memref<4x5x128x128xf32, #tpu.memory_space<vmem>>, vector<1x1x128x128xf32>
    %131 = vector.shape_cast %130 : vector<1x1x128x128xf32> to vector<128x128xf32>
    %cst_139 = arith.constant dense<0.000000e+00> : vector<16x128xf32>
    %132 = tpu.matmul %129, %131, %cst_139 {dimension_numbers = #tpu.dot_dimension_numbers<[1], [0], [0], [1], [0, 0, 1, 1], [], []>} : vector<16x128xf32>, vector<128x128xf32>, vector<16x128xf32> -> vector<16x128xf32>
    %133 = vector.broadcast %128 : vector<1x128xf32> to vector<16x128xf32>
    %134 = arith.addf %133, %132 : vector<16x128xf32>
    %c1_140 = arith.constant 1 : index
    %c0_141 = arith.constant 0 : index
    %135 = vector.load %arg9[%c1_140, %c0_141] : memref<20x128xf32, #tpu.memory_space<vmem>>, vector<16x128xf32>
    %c3_142 = arith.constant 3 : index
    %c1_143 = arith.constant 1 : index
    %c0_144 = arith.constant 0 : index
    %c0_145 = arith.constant 0 : index
    %136 = vector.load %arg3[%c3_142, %c1_143, %c0_144, %c0_145] : memref<4x5x128x128xf32, #tpu.memory_space<vmem>>, vector<1x1x128x128xf32>
    %137 = vector.shape_cast %136 : vector<1x1x128x128xf32> to vector<128x128xf32>
    %cst_146 = arith.constant dense<0.000000e+00> : vector<16x128xf32>
    %138 = tpu.matmul %135, %137, %cst_146 {dimension_numbers = #tpu.dot_dimension_numbers<[1], [0], [0], [1], [0, 0, 1, 1], [], []>} : vector<16x128xf32>, vector<128x128xf32>, vector<16x128xf32> -> vector<16x128xf32>
    %139 = arith.addf %134, %138 : vector<16x128xf32>
    %c2_147 = arith.constant 2 : index
    %c0_148 = arith.constant 0 : index
    %140 = vector.load %arg9[%c2_147, %c0_148] : memref<20x128xf32, #tpu.memory_space<vmem>>, vector<16x128xf32>
    %c3_149 = arith.constant 3 : index
    %c2_150 = arith.constant 2 : index
    %c0_151 = arith.constant 0 : index
    %c0_152 = arith.constant 0 : index
    %141 = vector.load %arg3[%c3_149, %c2_150, %c0_151, %c0_152] : memref<4x5x128x128xf32, #tpu.memory_space<vmem>>, vector<1x1x128x128xf32>
    %142 = vector.shape_cast %141 : vector<1x1x128x128xf32> to vector<128x128xf32>
    %cst_153 = arith.constant dense<0.000000e+00> : vector<16x128xf32>
    %143 = tpu.matmul %140, %142, %cst_153 {dimension_numbers = #tpu.dot_dimension_numbers<[1], [0], [0], [1], [0, 0, 1, 1], [], []>} : vector<16x128xf32>, vector<128x128xf32>, vector<16x128xf32> -> vector<16x128xf32>
    %144 = arith.addf %139, %143 : vector<16x128xf32>
    %c3_154 = arith.constant 3 : index
    %c0_155 = arith.constant 0 : index
    %145 = vector.load %arg9[%c3_154, %c0_155] : memref<20x128xf32, #tpu.memory_space<vmem>>, vector<16x128xf32>
    %c3_156 = arith.constant 3 : index
    %c3_157 = arith.constant 3 : index
    %c0_158 = arith.constant 0 : index
    %c0_159 = arith.constant 0 : index
    %146 = vector.load %arg3[%c3_156, %c3_157, %c0_158, %c0_159] : memref<4x5x128x128xf32, #tpu.memory_space<vmem>>, vector<1x1x128x128xf32>
    %147 = vector.shape_cast %146 : vector<1x1x128x128xf32> to vector<128x128xf32>
    %cst_160 = arith.constant dense<0.000000e+00> : vector<16x128xf32>
    %148 = tpu.matmul %145, %147, %cst_160 {dimension_numbers = #tpu.dot_dimension_numbers<[1], [0], [0], [1], [0, 0, 1, 1], [], []>} : vector<16x128xf32>, vector<128x128xf32>, vector<16x128xf32> -> vector<16x128xf32>
    %149 = arith.addf %144, %148 : vector<16x128xf32>
    %c4_161 = arith.constant 4 : index
    %c0_162 = arith.constant 0 : index
    %150 = vector.load %arg9[%c4_161, %c0_162] : memref<20x128xf32, #tpu.memory_space<vmem>>, vector<16x128xf32>
    %c3_163 = arith.constant 3 : index
    %c4_164 = arith.constant 4 : index
    %c0_165 = arith.constant 0 : index
    %c0_166 = arith.constant 0 : index
    %151 = vector.load %arg3[%c3_163, %c4_164, %c0_165, %c0_166] : memref<4x5x128x128xf32, #tpu.memory_space<vmem>>, vector<1x1x128x128xf32>
    %152 = vector.shape_cast %151 : vector<1x1x128x128xf32> to vector<128x128xf32>
    %cst_167 = arith.constant dense<0.000000e+00> : vector<16x128xf32>
    %153 = tpu.matmul %150, %152, %cst_167 {dimension_numbers = #tpu.dot_dimension_numbers<[1], [0], [0], [1], [0, 0, 1, 1], [], []>} : vector<16x128xf32>, vector<128x128xf32>, vector<16x128xf32> -> vector<16x128xf32>
    %154 = arith.addf %149, %153 : vector<16x128xf32>
    %cst_168 = arith.constant 0.000000e+00 : f32
    %155 = vector.broadcast %cst_168 : f32 to vector<16x128xf32>
    %156 = arith.cmpf ogt, %154, %155 : vector<16x128xf32>
    %cst_169 = arith.constant 1.000000e-01 : f32
    %157 = vector.broadcast %cst_169 : f32 to vector<16x128xf32>
    %158 = arith.mulf %157, %154 : vector<16x128xf32>
    %159 = arith.select %156, %154, %158 : vector<16x128xi1>, vector<16x128xf32>
    %160 = arith.addf %125, %159 : vector<16x128xf32>
    %161 = vector.broadcast %6 : vector<16x1xf32> to vector<16x128xf32>
    %162 = arith.mulf %160, %161 : vector<16x128xf32>
    %c0_170 = arith.constant 0 : index
    %c0_171 = arith.constant 0 : index
    %c0_172 = arith.constant 0 : index
    %163 = vector.load %arg7[%c0_170, %c0_171, %c0_172] : memref<1x16x128xf32, #tpu.memory_space<vmem>>, vector<1x16x128xf32>
    %164 = vector.shape_cast %163 : vector<1x16x128xf32> to vector<16x128xf32>
    %165 = vector.shape_cast %162 : vector<16x128xf32> to vector<1x16x128xf32>
    tpu.vector_store %arg7[%c0_170, %c0_171, %c0_172], %165 {strides = array<i32>} : memref<1x16x128xf32, #tpu.memory_space<vmem>>, vector<1x16x128xf32>,
    %c0_173 = arith.constant 0 : index
    %c0_174 = arith.constant 0 : index
    %166 = vector.load %arg5[%c0_173, %c0_174] : memref<128x256xf32, #tpu.memory_space<vmem>>, vector<128x256xf32>
    %cst_175 = arith.constant dense<0.000000e+00> : vector<16x256xf32>
    %167 = tpu.matmul %162, %166, %cst_175 {dimension_numbers = #tpu.dot_dimension_numbers<[1], [0], [0], [1], [0, 0, 1, 1], [], []>} : vector<16x128xf32>, vector<128x256xf32>, vector<16x256xf32> -> vector<16x256xf32>
    %c0_176 = arith.constant 0 : index
    %c0_177 = arith.constant 0 : index
    %168 = vector.load %arg6[%c0_176, %c0_177] : memref<1x256xf32, #tpu.memory_space<vmem>>, vector<1x256xf32>
    %169 = vector.broadcast %168 : vector<1x256xf32> to vector<16x256xf32>
    %170 = arith.addf %167, %169 : vector<16x256xf32>
    %171 = vector.broadcast %6 : vector<16x1xf32> to vector<16x256xf32>
    %172 = arith.mulf %170, %171 : vector<16x256xf32>
    %c0_178 = arith.constant 0 : index
    %c0_179 = arith.constant 0 : index
    %c0_180 = arith.constant 0 : index
    %173 = vector.load %arg8[%c0_178, %c0_179, %c0_180] : memref<1x16x256xf32, #tpu.memory_space<vmem>>, vector<1x16x256xf32>
    %174 = vector.shape_cast %173 : vector<1x16x256xf32> to vector<16x256xf32>
    %175 = vector.shape_cast %172 : vector<16x256xf32> to vector<1x16x256xf32>
    tpu.vector_store %arg8[%c0_178, %c0_179, %c0_180], %175 {strides = array<i32>} : memref<1x16x256xf32, #tpu.memory_space<vmem>>, vector<1x16x256xf32>,
    return
  }
  func.func @transform_0(%arg0: i32, %arg1: memref<2xi32, #tpu.memory_space<smem>>) -> (i32, i32, i32) {
    %c0_i32 = arith.constant 0 : i32
    %c0_i32_0 = arith.constant 0 : i32
    %c0_i32_1 = arith.constant 0 : i32
    return %arg0, %c0_i32, %c0_i32_0 : i32, i32, i32
  }
  func.func @transform_1(%arg0: i32, %arg1: memref<2xi32, #tpu.memory_space<smem>>) -> (i32, i32, i32, i32) {
    %c0_i32 = arith.constant 0 : i32
    %c0_i32_0 = arith.constant 0 : i32
    %c0_i32_1 = arith.constant 0 : i32
    %c0_i32_2 = arith.constant 0 : i32
    %c0_i32_3 = arith.constant 0 : i32
    return %c0_i32, %c0_i32_0, %c0_i32_1, %c0_i32_2 : i32, i32, i32, i32
  }
  func.func @transform_2(%arg0: i32, %arg1: memref<2xi32, #tpu.memory_space<smem>>) -> (i32, i32, i32) {
    %c0_i32 = arith.constant 0 : i32
    %c0_i32_0 = arith.constant 0 : i32
    %c0_i32_1 = arith.constant 0 : i32
    %c0_i32_2 = arith.constant 0 : i32
    return %c0_i32, %c0_i32_0, %c0_i32_1 : i32, i32, i32
  }
  func.func @transform_3(%arg0: i32, %arg1: memref<2xi32, #tpu.memory_space<smem>>) -> (i32, i32) {
    %c0_i32 = arith.constant 0 : i32
    %c0_i32_0 = arith.constant 0 : i32
    %c0_i32_1 = arith.constant 0 : i32
    return %c0_i32, %c0_i32_0 : i32, i32
  }
  func.func @transform_4(%arg0: i32, %arg1: memref<2xi32, #tpu.memory_space<smem>>) -> (i32, i32) {
    %c0_i32 = arith.constant 0 : i32
    %c0_i32_0 = arith.constant 0 : i32
    %c0_i32_1 = arith.constant 0 : i32
    return %c0_i32, %c0_i32_0 : i32, i32
  }
  func.func @transform_5(%arg0: i32, %arg1: memref<2xi32, #tpu.memory_space<smem>>) -> (i32, i32, i32) {
    %c0_i32 = arith.constant 0 : i32
    %c0_i32_0 = arith.constant 0 : i32
    %c0_i32_1 = arith.constant 0 : i32
    return %arg0, %c0_i32, %c0_i32_0 : i32, i32, i32
  }
  func.func @transform_6(%arg0: i32, %arg1: memref<2xi32, #tpu.memory_space<smem>>) -> (i32, i32, i32) {
    %c0_i32 = arith.constant 0 : i32
    %c0_i32_0 = arith.constant 0 : i32
    %c0_i32_1 = arith.constant 0 : i32
    return %arg0, %c0_i32, %c0_i32_0 : i32, i32, i32
  }
}

</mosaic_0001>

<bundles_post_ra>
// kernel: tpu_custom_call.1
= control target key start
LH: loop header
LB: loop body
LE: loop exit
PB: predicated region body
PF: predicated region fallthrough
CT: control target
= control target key end

     0   :  { %s5300_s0 = inlined_call_operand.hbm [shape: s32[2], index: 0, kind: input, shape index: {}]   ;;  %s5301_s1 = inlined_call_operand.hbm [shape: f32[2,16,128], index: 1, kind: input, shape index: {}]   ;;  %s5302_s2 = inlined_call_operand.hbm [shape: f32[4,5,128,128], index: 2, kind: input, shape index: {}]   ;;  %s5303_s3 = inlined_call_operand.hbm [shape: f32[4,1,128], index: 3, kind: input, shape index: {}]   ;;  %s5304_s4 = inlined_call_operand.hbm [shape: f32[128,256], index: 4, kind: input, shape index: {}]   ;;  %s5305_s5 = inlined_call_operand.hbm [shape: f32[1,256], index: 5, kind: input, shape index: {}]   ;;  %s5306_s6 = inlined_call_operand.hbm [shape: f32[2,16,128], index: 6, kind: output, shape index: {0}]   ;;  %s5307_s7 = inlined_call_operand.hbm [shape: f32[2,16,256], index: 7, kind: output, shape index: {1}]  }
   0x1   :  { %5314 = sst [smem:[#allocation24_spill]] %s5302_s2  ;;  %s4576_s26 = scalar_lea.hbm %s5300_s0, 16 }
   0x2   :  { %p4577_p0 = scmp.ne.s32.totalorder %s5300_s0, %s4576_s26  ;;  %p4580_p1 = scmp.lt.u32.totalorder %s4576_s26, %s5300_s0 }
   0x4   :  { %p4582_p2 = pnand %p4580_p1, %p4577_p0 }
   0x6   :  { %4585 = shalt.err (!%p4582_p2)  }
   0x7   :  { %s4838_s8 = smov [#allocation4]  }
   0x8   :  { %14 = dma.hbm_to_smem %s5300_s0, 16, %s4838_s8, [#allocation3] }
   0x9   :  { %4800 = dma.done.wait [#allocation3], 16 }
   0xa   :  { %4801 = vsyncadd [#allocation3], 4294967280 }
   0xb   :  { %16 = sfence }
   0xc   :  { %17 = vsyncpa [#allocation6], 0 }
   0xd   :  { %19 = vsyncpa [#allocation6 + $0x1], 0 }
   0xe   :  { %20 = vsyncpa [#allocation9], 0 }
   0xf   :  { %21 = vsyncpa [#allocation12], 0 }
  0x10   :  { %22 = vsyncpa [#allocation7], 0 }
  0x11   :  { %24 = vsyncpa [#allocation7 + $0x1], 0 }
  0x12   :  { %25 = vsyncpa [#allocation16], 0 }
  0x13   :  { %27 = vsyncpa [#allocation16 + $0x1], 0  ;;  %s4908_s11 = smov 0   ;;  %s4910_s12 = smov 0  }
  0x14   :  { %s4912_s13 = smov 0   ;;  %s4914_s14 = smov 0  }
  0x15 LB: > { %s4929_s0 = sadd.s32 4294967295, %s4836_s14   ;;  %s2666_s15 = sadd.s32 4294967294, %s4836_s14   ;;  %s4836_s14 = sphi %s4914_s14, %s5339_s14   ;;  %s4832_s13 = sphi %s4912_s13, %s5338_s13   ;;  %s4828_s12 = sphi %s4910_s12, %s5337_s12   ;;  %s4824_s11 = sphi %s4908_s11, %s5336_s11  }
  0x16   : > { %p53_p3 = scmp.ne.s32.totalorder %s4828_s12, %s4824_s11  ;;  %p5308_p4 = scmp.eq.s32.totalorder %s4929_s0, 0 }
  0x17   : > { %p167_p6 = scmp.eq.s32.totalorder %s2666_s15, 1  ;;  %p2667_p8 = scmp.ge.s32.totalorder %s4836_s14, 1 }
  0x18   : > { %p4938_p7 = por %p5308_p4, %p53_p3  ;;  %p200_p10 = scmp.lt.s32.totalorder %s4836_s14, 3 }
  0x19   : > { %p4943_p9 = por %p167_p6, %p53_p3  ;;  %s4839_s19 = smov [#allocation8]  }
  0x1a   : > { %s5315_s16 = scalar_select %p4938_p7, 1, 0 }
  0x1b   : > { %s5316_s17 = scalar_select %p4943_p9, 1, 0 }
  0x1c   : > { %p4948_p11 = pnand %p2667_p8, %p200_p10  ;;  %s212_s20 = sshll.u32 %s4839_s19, 4  ;;  %s4952_s20 = int_to_ptr.vmem [resolvable:$true] %s212_s20 }
  0x1d   : > { %5317 = sst [smem:[#allocation23_spill]] %s5316_s17  ;;  %s4840_s22 = smov [#allocation11]  }
  0x1e   : > { %s5318_s18 = scalar_select %p4948_p11, 1, 0 }
  0x1f   : > { %p4495_p12 = pneg %p4948_p11  ;;  %s238_s23 = sshll.u32 %s4840_s22, 4  ;;  %s4963_s23 = int_to_ptr.vmem [resolvable:$true] %s238_s23 }
  0x20   : > { %s5320_s2 = sld [smem:[#allocation24_spill]] }
  0x21   : > { %p4959_p0 = pnand %p4495_p12, %p5308_p4 }
  0x23   : > { %p4973_p2 = pneg %p4959_p0 }
  0x26   : > { %s4586_s26 = scalar_lea.hbm %s5320_s2, 40960 }
  0x27   : > { %p4587_p1 = scmp.ne.s32.totalorder %s5320_s2, %s4586_s26  ;;  %p4593_p8 = scmp.lt.u32.totalorder %s4586_s26, %s5320_s2 }
  0x29   : > { %p4589_p3 = pnand %p4973_p2, %p4587_p1 }
  0x2b   : > { %p4590_p6 = pneg %p4589_p3 }
  0x2d   : > { %p4595_p10 = pnand %p4593_p8, %p4590_p6 }
  0x2f   : > { %4598 = shalt.err (!%p4595_p10)
}
  0x30   : > { %s4599_s9 = scalar_lea.vmem %s4952_s20, 40960  ;;  %p4607_p5 = scmp.lt.s32.totalorder %s4952_s20, %s4952_s20 }
  0x31   : > { %p4600_p12 = scmp.ne.s32.totalorder %s4952_s20, %s4599_s9  ;;  %p4608_p9 = scmp.lt.s32.totalorder %s4599_s9, %s4599_s9 }
  0x33   : > { %p4602_p13 = pnand %p4600_p12, %p4973_p2  ;;  %p4609_p1 = por %p4608_p9, %p4607_p5 }
  0x35   : > { %p4603_p4 = pneg %p4602_p13 }
  0x37   : > { %p4610_p3 = pnand %p4609_p1, %p4603_p4 }
  0x39   : > { %4613 = shalt.err (!%p4610_p3)
}
  0x3a   : > { %s5309_s10 = smov 128   ;;  %s5310_s15 = smov 8  }
  0x3b   : > { %4498 = dma.hbm_to_vmem [thread:$0]  (!%p4959_p0), %s5320_s2, 40960, %s4952_s20, [#allocation9], %s5309_s10, %s5309_s10, %s5310_s15  }
  0x3c   : > { %s4614_s26 = scalar_lea.hbm %s5304_s4, 4096 }
  0x3d   : > { %p4615_p4 = scmp.ne.s32.totalorder %s5304_s4, %s4614_s26  ;;  %p4621_p13 = scmp.lt.u32.totalorder %s4614_s26, %s5304_s4 }
  0x3f   : > { %p4617_p5 = pnand %p4615_p4, %p4973_p2 }
  0x41   : > { %p4618_p9 = pneg %p4617_p5 }
  0x43   : > { %p4623_p6 = pnand %p4621_p13, %p4618_p9 }
  0x45   : > { %4626 = shalt.err (!%p4623_p6)
}
  0x46   : > { %s4627_s20 = scalar_lea.vmem %s4963_s23, 4096  ;;  %p4635_p1 = scmp.lt.s32.totalorder %s4963_s23, %s4963_s23 }
  0x47   : > { %p4628_p8 = scmp.ne.s32.totalorder %s4963_s23, %s4627_s20  ;;  %p4636_p3 = scmp.lt.s32.totalorder %s4627_s20, %s4627_s20 }
  0x49   : > { %p4630_p10 = pnand %p4628_p8, %p4973_p2  ;;  %p4637_p4 = por %p4636_p3, %p4635_p1 }
  0x4b   : > { %p4631_p12 = pneg %p4630_p10 }
  0x4d   : > { %p4638_p5 = pnand %p4637_p4, %p4631_p12 }
  0x4f   : > { %4641 = shalt.err (!%p4638_p5)
}
  0x50   : > { %s4843_s9 = smov 256   ;;  %s4844_s19 = smov 16  }
  0x51   : > { %4504 = dma.hbm_to_vmem [thread:$0]  (!%p4959_p0), %s5304_s4, 4096, %s4963_s23, [#allocation12], %s4843_s9, %s4843_s9, %s4844_s19  }
  0x52   : > { %s4845_s25 = smov [#allocation10]   ;;  %s4846_s27 = smov [#allocation13]  }
  0x53   : > { %s225_s26 = sshll.u32 %s4845_s25, 4  ;;  %s252_s28 = sshll.u32 %s4846_s27, 4  ;;  %s226_s26 = int_to_ptr.vmem [resolvable:$true] %s225_s26  ;;  %s253_s28 = int_to_ptr.vmem [resolvable:$true] %s252_s28 }
  0x54   : > { %s4642_s20 = scalar_lea.hbm %s5303_s3, 64 }
  0x55   : > { %p4643_p9 = scmp.ne.s32.totalorder %s5303_s3, %s4642_s20  ;;  %p4649_p8 = scmp.lt.u32.totalorder %s4642_s20, %s5303_s3 }
  0x57   : > { %p4645_p13 = pnand %p4643_p9, %p4973_p2 }
  0x59   : > { %p4646_p6 = pneg %p4645_p13 }
  0x5b   : > { %p4651_p10 = pnand %p4649_p8, %p4646_p6 }
  0x5d   : > { %4654 = shalt.err (!%p4651_p10)
}
  0x5e   : > { %s4655_s23 = scalar_lea.vmem %s226_s26, 64  ;;  %p4663_p4 = scmp.lt.s32.totalorder %s226_s26, %s226_s26 }
  0x5f   : > { %p4656_p12 = scmp.ne.s32.totalorder %s226_s26, %s4655_s23  ;;  %p4664_p5 = scmp.lt.s32.totalorder %s4655_s23, %s4655_s23 }
  0x61   : > { %p4658_p1 = pnand %p4656_p12, %p4973_p2  ;;  %p4665_p7 = por %p4664_p5, %p4663_p4 }
  0x63   : > { %p4659_p3 = pneg %p4658_p1 }
  0x65   : > { %p4666_p11 = pnand %p4665_p7, %p4659_p3 }
  0x67   : > { %4669 = shalt.err (!%p4666_p11)
}
  0x68   : > { %s4847_s10 = smov 1   ;;  %s4670_s22 = scalar_lea.hbm %s5305_s5, 32 }
  0x69   : > { %4501 = dma.hbm_to_vmem [thread:$0]  (!%p4959_p0), %s5303_s3, 64, %s226_s26, [#allocation9], %s4844_s19, %s4844_s19, %s4847_s10  }
  0x6a   : > { %p4671_p9 = scmp.ne.s32.totalorder %s5305_s5, %s4670_s22  ;;  %p4677_p13 = scmp.lt.u32.totalorder %s4670_s22, %s5305_s5 }
  0x6c   : > { %p4673_p7 = pnand %p4671_p9, %p4973_p2 }
  0x6e   : > { %p4674_p11 = pneg %p4673_p7 }
  0x70   : > { %p4679_p6 = pnand %p4677_p13, %p4674_p11 }
  0x72   : > { %4682 = shalt.err (!%p4679_p6)
}
  0x73   : > { %s4683_s8 = scalar_lea.vmem %s253_s28, 32  ;;  %p4691_p1 = scmp.lt.s32.totalorder %s253_s28, %s253_s28 }
  0x74   : > { %p4684_p8 = scmp.ne.s32.totalorder %s253_s28, %s4683_s8  ;;  %p4692_p3 = scmp.lt.s32.totalorder %s4683_s8, %s4683_s8 }
  0x76   : > { %p4686_p10 = pnand %p4684_p8, %p4973_p2  ;;  %p4693_p4 = por %p4692_p3, %p4691_p1 }
  0x78   : > { %p4687_p12 = pneg %p4686_p10 }
  0x7a   : > { %p4694_p5 = pnand %p4693_p4, %p4687_p12 }
  0x7c   : > { %4697 = shalt.err (!%p4694_p5)
}
  0x7d   : > { %4507 = dma.hbm_to_vmem [thread:$0]  (!%p4959_p0), %s5305_s5, 32, %s253_s28, [#allocation12]  }
  0x7e   : > { %s5057_s29 = sadd.s32 1, %s4836_s14   ;;  %s40_s21 = sadd.s32 1, %s4832_s13 }
  0x7f   : > { %s37_s20 = ssub.s32 %s4836_s14, %s5057_s29  ;;  %p47_p9 = scmp.ne.s32.totalorder %s4832_s13, %s4828_s12 }
  0x80   : > { %p38_p2 = scmp.eq.s32.totalorder %s37_s20, 0  ;;  %p48_p7 = scmp.eq.s32.totalorder %s4836_s14, 0 }
  0x81   : > { %p4523_p11 = scmp.lt.s32.totalorder %s4836_s14, 2  ;;  %p5322_p6 = scmp.eq.s32.totalorder %s4929_s0, 1 }
  0x82   : > { %s5067_s23 = scalar_select %p38_p2, %s4832_s13, %s40_s21  }
  0x83   : > { %p49_p13 = por %p48_p7, %p47_p9  ;;  %p5071_p8 = por %p5322_p6, %p47_p9 }
  0x84   : > { %s263_s15 = sand.u32 1, %s4832_s13   ;;  %s2698_s9 = sshll.u32 %s4836_s14, 8 }
  0x85   : > { %s2673_s28 = sshll.u32 %s263_s15, 4  ;;  %s5080_s22 = scalar_lea.hbm %s5301_s1, %s2698_s9 }
  0x86   : > { %s267_s24 = scalar_lea.vmem [#allocation5], %s2673_s28  ;;  %p5082_p0 = pnand %p4523_p11, %p49_p13 }
  0x87   : > { %s274_s25 = sshll.u32 %s267_s24, 4  ;;  %s5088_s30 = scalar_lea.sflag [#allocation6], %s263_s15  ;;  %s5086_s25 = int_to_ptr.vmem [resolvable:$true] %s274_s25 }
  0x88   : > { %s4698_s8 = scalar_lea.hbm %s5080_s22, 256  ;;  %p4700_p12 = pneg %p5082_p0 }
  0x89   : > { %p4699_p10 = scmp.ne.s32.totalorder %s5080_s22, %s4698_s8  ;;  %s4703_s20 = scalar_lea.hbm %s5301_s1, 512 }
  0x8a   : > { %p4704_p4 = scmp.lt.u32.totalorder %s5080_s22, %s5301_s1  ;;  %p4705_p5 = scmp.lt.u32.totalorder %s4703_s20, %s4698_s8 }
  0x8b   : > { %p4701_p1 = pnand %p4700_p12, %p4699_p10  ;;  %p4707_p9 = scmp.lt.u32.totalorder %s4698_s8, %s5080_s22 }
  0x8c   : > { %p4706_p2 = por %p4705_p5, %p4704_p4 }
  0x8d   : > { %p4702_p3 = pneg %p4701_p1 }
  0x8e   : > { %p4708_p7 = por %p4707_p9, %p4706_p2 }
  0x90   : > { %p4709_p11 = pnand %p4708_p7, %p4702_p3 }
  0x92   : > { %4712 = shalt.err (!%p4709_p11)
}
  0x93   : > { %s4713_s15 = scalar_lea.vmem %s5086_s25, 256  ;;  %s4848_s28 = smov [#allocation5]  }
  0x94   : > { %p4714_p13 = scmp.ne.s32.totalorder %s5086_s25, %s4713_s15  ;;  %s4718_s2 = sshll.u32 %s4848_s28, 4  ;;  %s4719_s2 = int_to_ptr.vmem [resolvable:$false] %s4718_s2 }
  0x95   : > { %s4720_s17 = scalar_lea.vmem %s4719_s2, 512  ;;  %p4721_p1 = scmp.lt.s32.totalorder %s5086_s25, %s4719_s2 }
  0x96   : > { %p4716_p6 = pnand %p4714_p13, %p4700_p12  ;;  %p4722_p4 = scmp.lt.s32.totalorder %s4720_s17, %s4713_s15 }
  0x98   : > { %p4717_p10 = pneg %p4716_p6  ;;  %p4723_p5 = por %p4722_p4, %p4721_p1 }
  0x9a   : > { %p4724_p2 = pnand %p4723_p5, %p4717_p10 }
  0x9c   : > { %4727 = shalt.err (!%p4724_p2)
}
  0x9d   : > { %s5325_s24 = smov 8   ;;  %s5326_s8 = smov 128  }
  0x9e   : > { %4511 = dma.hbm_to_vmem [thread:$0]  (!%p5082_p0), %s5080_s22, 256, %s5086_s25, %s5088_s30, %s5326_s8, %s5326_s8, %s5325_s24  }
  0x9f   : > { %p5327_p12 = scmp.ne.s32.totalorder %s5318_s18, 0 }
  0xa0   : > { %s5122_s19 = sand.u32 (!%p5327_p12), 1, %s4828_s12   ;;  %p5328_p3 = scmp.ne.s32.totalorder (!%p5327_p12), %s5315_s16, 0 }
  0xa1   : > { %286 = sbr.rel (%p5327_p12) target bundleno = 1841 (0x731), region = 40  ;;  %s2677_s26 = sshll.u32 (!%p5327_p12), %s5122_s19, 4 }
  0xa2   : > { %s289_s20 = scalar_lea.sflag (!%p5327_p12), [#allocation6], %s5122_s19  ;;  %s5128_s27 = scalar_lea.vmem (!%p5327_p12), [#allocation5], %s2677_s26 }
  0xa8   : > { %4803 = dma.done.wait (%p5328_p3), %s289_s20, 256  }
  0xa9   : > { %4805 = vsyncadd (%p5328_p3), %s289_s20, 4294967040  ;;  %p5329_p0 = scmp.eq.s32.totalorder %s4929_s0, 0 }
  0xab   : > { %4807 = dma.done.wait (%p5329_p0), [#allocation9], 41024   ;;  %p5330_p9 = pmov %p5329_p0 }
  0xac   : > { %p5331_p7 = pmov %p5329_p0 }
  0xad   : > { %4809 = vsyncadd (%p5330_p9), [#allocation9], 4294926272 }
  0xae   : > { %4811 = dma.done.wait (%p5331_p7), [#allocation12], 4128   ;;  %p5332_p11 = pmov %p5329_p0 }
  0xaf   : > { %v343_v0 = vlaneseq  ;;  %s342_s18 = sld [smem:[#allocation4 + %s4929_s0]]  ;;  %v4849_v1 = vmov 0.0   ;;  %v466_v4 = vld [vmem:[#allocation8 + $0x80] sm:$0xff]  ;;  %v467_v5 = vld [vmem:[#allocation8 + $0x88] sm:$0xff]  ;;  %v468_v6 = vld [vmem:[#allocation8 + $0x90] sm:$0xff]  ;;  %s334_s16 = scalar_lea.vmem [#allocation14], %s2677_s26 }
  0xb0   : > { %4813 = vsyncadd (%p5332_p11), [#allocation12], 4294963168  ;;  %353 = vst [vmem:[#allocation2] sm:$0x3] %v4849_v1  ;;  %v3793_v8 = vpack.c.bf16 %v467_v5, %v466_v4  ;;  %v469_v9 = vld [vmem:[#allocation8 + $0x98] sm:$0xff]  ;;  %v470_v11 = vld [vmem:[#allocation8 + $0xa0] sm:$0xff] }
  0xb1   : > { %354 = vst [vmem:[#allocation2 + $0x12] sm:$0x3] %v4849_v1  ;;  %v5145_v2 = vshrl.u32 %v343_v0, 7  ;;  %v3797_v10 = vpack.c.bf16 %v469_v9, %v468_v6  ;;  %v471_v12 = vld [vmem:[#allocation8 + $0xa8] sm:$0xff]  ;;  %v355_v16 = vld [vmem:[%s5128_s27] sm:$0xff]  ;;  %v473_v18 = vld [vmem:[#allocation8 + $0xb8] sm:$0xff] }
  0xb2   : > { %3794 = vmatprep.subr.bf16.mxu0 %v3793_v8  ;;  %v3801_v15 = vpack.c.bf16 %v471_v12, %v470_v11  ;;  %v472_v17 = vld [vmem:[#allocation8 + $0xb0] sm:$0xff]  ;;  %v356_v20 = vld [vmem:[%s5128_s27 + $0x8] sm:$0xff]  ;;  %v474_v23 = vld [vmem:[#allocation8 + $0xc0] sm:$0xff]  ;;  %s2507_s22 = sshll.u32 %s334_s16, 4  ;;  %s2699_s25 = sshll.u32 %s4929_s0, 8  ;;  %s5211_s22 = int_to_ptr.vmem [resolvable:$true] %s2507_s22 }
  0xb3   : > { %v345_v3 = vadd.s32 8, %v5145_v2  ;;  %3796 = vmatpush3.bf16.msra.mxu0 %v3793_v8  ;;  %v3805_v22 = vpack.c.bf16 %v473_v18, %v472_v17  ;;  %v475_v24 = vld [vmem:[#allocation8 + $0xc8] sm:$0xff]  ;;  %v476_v26 = vld [vmem:[#allocation8 + $0xd0] sm:$0xff]  ;;  %v477_v27 = vld [vmem:[#allocation8 + $0xd8] sm:$0xff]  ;;  %s5217_s9 = scalar_lea.hbm %s5306_s6, %s2699_s25  ;;  %s2489_s15 = scalar_lea.sflag [#allocation7], %s5122_s19 }
  0xb4   : > { %3798 = vmatprep.subr.bf16.mxu0 %v3797_v10  ;;  %v3809_v25 = vpack.c.bf16 %v475_v24, %v474_v23  ;;  %v3813_v29 = vpack.c.bf16 %v477_v27, %v476_v26  ;;  %v364_v30 = vld [vmem:[#allocation8] sm:$0xff]  ;;  %v365_v31 = vld [vmem:[#allocation8 + $0x8] sm:$0xff]  ;;  %v366_v35 = vld [vmem:[#allocation8 + $0x10] sm:$0xff]  ;;  %s4728_s28 = scalar_lea.vmem %s5211_s22, 256  ;;  %s4850_s2 = smov [#allocation14]  }
  0xb5   : > { %v346_v7 = vstv %s342_s18  ;;  %v478_v32 = vld [vmem:[#allocation8 + $0xe0] sm:$0xff]  ;;  %v479_v33 = vld [vmem:[#allocation8 + $0xe8] sm:$0xff]  ;;  %v3761_v34 = vpack.c.bf16 %v365_v31, %v364_v30  ;;  %v367_v36 = vld [vmem:[#allocation8 + $0x18] sm:$0xff]  ;;  %p4729_p13 = scmp.ne.s32.totalorder %s5211_s22, %s4728_s28  ;;  %s4732_s17 = sshll.u32 %s4850_s2, 4  ;;  %s4733_s17 = int_to_ptr.vmem [resolvable:$false] %s4732_s17 }
  0xb6   : > { %vm347_vm0 = vcmp.lt.s32.totalorder %v5145_v2, %v346_v7  ;;  %vm348_vm1 = vcmp.lt.s32.totalorder %v345_v3, %v346_v7  ;;  %v3765_v37 = vpack.c.bf16 %v367_v36, %v366_v35  ;;  %v368_v38 = vld [vmem:[#allocation8 + $0x20] sm:$0xff]  ;;  %v3817_v39 = vpack.c.bf16 %v479_v33, %v478_v32  ;;  %v369_v40 = vld [vmem:[#allocation8 + $0x28] sm:$0xff]  ;;  %v480_v41 = vld [vmem:[#allocation8 + $0xf0] sm:$0xff]  ;;  %s4734_s24 = scalar_lea.vmem %s4733_s17, 512  ;;  %p4735_p1 = scmp.lt.s32.totalorder %s5211_s22, %s4733_s17 }
  0xb7   : > { %v5150_v13 = vsel %vm347_vm0, 1.0, %v4849_v1  ;;  %v5153_v14 = vsel %vm348_vm1, 1.0, %v4849_v1  ;;  %3800 = vmatpush3.bf16.msra.mxu0 %v3797_v10  ;;  %3762 = vmatprep.subr.bf16.mxu1 %v3761_v34  ;;  %v481_v42 = vld [vmem:[#allocation8 + $0xf8] sm:$0xff]  ;;  %v3769_v43 = vpack.c.bf16 %v369_v40, %v368_v38  ;;  %v370_v44 = vld [vmem:[#allocation8 + $0x30] sm:$0xff]  ;;  %v562_v47 = vld [vmem:[#allocation8 + $0x100] sm:$0xff]  ;;  %p4730_p6 = pnand %p4729_p13, %p5071_p8  ;;  %p4736_p4 = scmp.lt.s32.totalorder %s4734_s24, %s4728_s28 }
  0xb8   : > { %v5157_v19 = vmul.f32 %v5150_v13, %v355_v16  ;;  %v5161_v21 = vmul.f32 %v5153_v14, %v356_v20  ;;  %3802 = vmatprep.subr.bf16.mxu0 %v3801_v15  ;;  %3764 = vmatpush3.bf16.msra.mxu1 %v3761_v34  ;;  %v371_v45 = vld [vmem:[#allocation8 + $0x38] sm:$0xff]  ;;  %v3821_v46 = vpack.c.bf16 %v481_v42, %v480_v41  ;;  %v563_v48 = vld [vmem:[#allocation8 + $0x108] sm:$0xff]  ;;  %v372_v50 = vld [vmem:[#allocation8 + $0x40] sm:$0xff] }
  0xb9   : > { %3766 = vmatprep.subr.bf16.mxu1 %v3765_v37  ;;  %v3773_v49 = vpack.c.bf16 %v371_v45, %v370_v44  ;;  %v373_v51 = vld [vmem:[#allocation8 + $0x48] sm:$0xff]  ;;  %v3825_v53 = vpack.c.bf16 %v563_v48, %v562_v47  ;;  %v564_v54 = vld [vmem:[#allocation8 + $0x110] sm:$0xff]  ;;  %v565_v55 = vld [vmem:[#allocation8 + $0x118] sm:$0xff]  ;;  %p4731_p10 = pneg %p4730_p6  ;;  %p4737_p5 = por %p4736_p4, %p4735_p1 }
  0xba   : > { %359 = vst [vmem:[#allocation2 + $0x2] sm:$0xff] %v5157_v19  ;;  %360 = vst [vmem:[#allocation2 + $0xa] sm:$0xff] %v5161_v21  ;;  %v3777_v56 = vpack.c.bf16 %v373_v51, %v372_v50  ;;  %v374_v57 = vld [vmem:[#allocation8 + $0x50] sm:$0xff]  ;;  %v375_v58 = vld [vmem:[#allocation8 + $0x58] sm:$0xff]  ;;  %v3829_v60 = vpack.c.bf16 %v565_v55, %v564_v54 }
  0xbb   : > { %3804 = vmatpush3.bf16.msra.mxu0 %v3801_v15  ;;  %v566_v61 = vld [vmem:[#allocation8 + $0x120] sm:$0xff]  ;;  %v567_v62 = vld [vmem:[#allocation8 + $0x128] sm:$0xff]  ;;  %v3781_v63 = vpack.c.bf16 %v375_v58, %v374_v57  ;;  %v568_v5 = vld [vmem:[#allocation8 + $0x130] sm:$0xff]  ;;  %p4738_p2 = pnand %p4737_p5, %p4731_p10 }
  0xbc   : > { %3806 = vmatprep.subr.bf16.mxu0 %v3805_v22  ;;  %3768 = vmatpush3.bf16.msra.mxu1 %v3765_v37  ;;  %v376_v0 = vld [vmem:[#allocation8 + $0x60] sm:$0xff]  ;;  %v377_v3 = vld [vmem:[#allocation8 + $0x68] sm:$0xff]  ;;  %v3833_v4 = vpack.c.bf16 %v567_v62, %v566_v61  ;;  %v569_v6 = vld [vmem:[#allocation8 + $0x138] sm:$0xff] }
  0xbd   : > { %3770 = vmatprep.subr.bf16.mxu1 %v3769_v43  ;;  %v3785_v7 = vpack.c.bf16 %v377_v3, %v376_v0  ;;  %v378_v8 = vld [vmem:[#allocation8 + $0x70] sm:$0xff]  ;;  %v379_v9 = vld [vmem:[#allocation8 + $0x78] sm:$0xff]  ;;  %v3837_v10 = vpack.c.bf16 %v569_v6, %v568_v5  ;;  %v570_v11 = vld [vmem:[#allocation8 + $0x140] sm:$0xff] }
  0xbe   : > { %v571_v12 = vld [vmem:[#allocation8 + $0x148] sm:$0xff]  ;;  %v3789_v15 = vpack.c.bf16 %v379_v9, %v378_v8  ;;  %v864_v16 = vld [vmem:[#allocation8 + $0x280] sm:$0xff]  ;;  %v572_v20 = vld [vmem:[#allocation8 + $0x150] sm:$0xff] }
  0xbf   : > { %3808 = vmatpush3.bf16.msra.mxu0 %v3805_v22  ;;  %v865_v17 = vld [vmem:[#allocation8 + $0x288] sm:$0xff]  ;;  %v3841_v18 = vpack.c.bf16 %v571_v12, %v570_v11  ;;  %v573_v22 = vld [vmem:[#allocation8 + $0x158] sm:$0xff]  ;;  %v866_v24 = vld [vmem:[#allocation8 + $0x290] sm:$0xff] }
  0xc0   : > { %3810 = vmatprep.subr.bf16.mxu0 %v3809_v25  ;;  %3772 = vmatpush3.bf16.msra.mxu1 %v3769_v43  ;;  %v3921_v23 = vpack.c.bf16 %v865_v17, %v864_v16  ;;  %v3845_v26 = vpack.c.bf16 %v573_v22, %v572_v20  ;;  %v868_v31 = vld [vmem:[#allocation8 + $0x2a0] sm:$0xff]  ;;  %v869_v32 = vld [vmem:[#allocation8 + $0x2a8] sm:$0xff]  ;;  %v576_v34 = vld [vmem:[#allocation8 + $0x170] sm:$0xff] }
  0xc1   : > { %v463_v28 = vld [vmem:[#allocation2 + $0x1] sm:$0xff]  ;;  %3774 = vmatprep.subr.bf16.mxu1 %v3773_v49  ;;  %v464_v59 = vld [vmem:[#allocation2 + $0x9] sm:$0xff]  ;;  %v3929_v36 = vpack.c.bf16 %v869_v32, %v868_v31  ;;  %v658_v38 = vld [vmem:[#allocation8 + $0x180] sm:$0xff] }
  0xc2   : > { %3128 = vmatprep.mubr.f32.mxu0 %v463_v28  ;;  %v362_v52 = vld [vmem:[#allocation2] sm:$0xff]  ;;  %v363_v27 = vld [vmem:[#allocation2 + $0x8] sm:$0xff]  ;;  %v574_v28 = vld [vmem:[#allocation8 + $0x160] sm:$0xff] }
  0xc3   : > { %3812 = vmatpush3.bf16.msra.mxu0 %v3809_v25  ;;  %3093 = vmatprep.mubr.f32.mxu1 %v362_v52  ;;  %v867_v25 = vld [vmem:[#allocation8 + $0x298] sm:$0xff]  ;;  %v660_v41 = vld [vmem:[#allocation8 + $0x190] sm:$0xff]  ;;  %v662_v45 = vld [vmem:[#allocation8 + $0x1a0] sm:$0xff] }
  0xc4   : > { %3814 = vmatprep.subr.bf16.mxu0 %v3813_v29  ;;  %3776 = vmatpush3.bf16.msra.mxu1 %v3773_v49  ;;  %v3925_v30 = vpack.c.bf16 %v867_v25, %v866_v24  ;;  %v577_v35 = vld [vmem:[#allocation8 + $0x178] sm:$0xff]  ;;  %v655_v44 = vld [vmem:[#allocation2 + $0x3] sm:$0xff]  ;;  %v666_v51 = vld [vmem:[#allocation8 + $0x1c0] sm:$0xff] }
  0xc5   : > { %3778 = vmatprep.subr.bf16.mxu1 %v3777_v56  ;;  %v3853_v37 = vpack.c.bf16 %v577_v35, %v576_v34  ;;  %v661_v42 = vld [vmem:[#allocation8 + $0x198] sm:$0xff]  ;;  %v664_v48 = vld [vmem:[#allocation8 + $0x1b0] sm:$0xff]  ;;  %v667_v52 = vld [vmem:[#allocation8 + $0x1c8] sm:$0xff] }
  0xc6   : > { %v3861_v43 = vpack.c.bf16 %v661_v42, %v660_v41  ;;  %v665_v49 = vld [vmem:[#allocation8 + $0x1b8] sm:$0xff]  ;;  %v668_v54 = vld [vmem:[#allocation8 + $0x1d0] sm:$0xff]  ;;  %v670_v57 = vld [vmem:[#allocation8 + $0x1e0] sm:$0xff] }
  0xc7   : > { %3816 = vmatpush3.bf16.msra.mxu0 %v3813_v29  ;;  %v575_v29 = vld [vmem:[#allocation8 + $0x168] sm:$0xff]  ;;  %v3869_v50 = vpack.c.bf16 %v665_v49, %v664_v48  ;;  %v669_v55 = vld [vmem:[#allocation8 + $0x1d8] sm:$0xff]  ;;  %v758_v9 = vld [vmem:[#allocation8 + $0x220] sm:$0xff] }
  0xc8   : > { %3818 = vmatprep.subr.bf16.mxu0 %v3817_v39  ;;  %3780 = vmatpush3.bf16.msra.mxu1 %v3777_v56  ;;  %v3849_v33 = vpack.c.bf16 %v575_v29, %v574_v28  ;;  %v3877_v56 = vpack.c.bf16 %v669_v55, %v668_v54  ;;  %v671_v58 = vld [vmem:[#allocation8 + $0x1e8] sm:$0xff]  ;;  %v673_v61 = vld [vmem:[#allocation8 + $0x1f8] sm:$0xff]  ;;  %v760_v12 = vld [vmem:[#allocation8 + $0x230] sm:$0xff] }
  0xc9   : > { %3782 = vmatprep.subr.bf16.mxu1 %v3781_v63  ;;  %v755_v0 = vld [vmem:[#allocation8 + $0x208] sm:$0xff]  ;;  %v757_v5 = vld [vmem:[#allocation8 + $0x218] sm:$0xff]  ;;  %v762_v17 = vld [vmem:[#allocation8 + $0x240] sm:$0xff] }
  0xca   : > { %v656_v6 = vld [vmem:[#allocation2 + $0xb] sm:$0xff]  ;;  %v766_v25 = vld [vmem:[#allocation8 + $0x260] sm:$0xff]  ;;  %v877_v42 = vld [vmem:[#allocation8 + $0x2e8] sm:$0xff] }
  0xcb   : > { %3820 = vmatpush3.bf16.msra.mxu0 %v3817_v39  ;;  %v659_v39 = vld [vmem:[#allocation8 + $0x188] sm:$0xff]  ;;  %v764_v22 = vld [vmem:[#allocation8 + $0x250] sm:$0xff]  ;;  %v769_v29 = vld [vmem:[#allocation8 + $0x278] sm:$0xff] }
  0xcc   : > { %3822 = vmatprep.subr.bf16.mxu0 %v3821_v46  ;;  %3784 = vmatpush3.bf16.msra.mxu1 %v3781_v63  ;;  %v3857_v40 = vpack.c.bf16 %v659_v39, %v658_v38  ;;  %v754_v63 = vld [vmem:[#allocation8 + $0x200] sm:$0xff]  ;;  %v751_v8 = vld [vmem:[#allocation2 + $0x4] sm:$0xff]  ;;  %v752_v31 = vld [vmem:[#allocation2 + $0xc] sm:$0xff] }
  0xcd   : > { %3786 = vmatprep.subr.bf16.mxu1 %v3785_v7  ;;  %v3889_v3 = vpack.c.bf16 %v755_v0, %v754_v63  ;;  %v768_v28 = vld [vmem:[#allocation8 + $0x270] sm:$0xff]  ;;  %v872_v35 = vld [vmem:[#allocation8 + $0x2c0] sm:$0xff]  ;;  %v875_v39 = vld [vmem:[#allocation8 + $0x2d8] sm:$0xff] }
  0xce   : > { %v870_v32 = vld [vmem:[#allocation8 + $0x2b0] sm:$0xff]  ;;  %v876_v41 = vld [vmem:[#allocation8 + $0x2e0] sm:$0xff]  ;;  %v967_v48 = vld [vmem:[#allocation8 + $0x308] sm:$0xff] }
  0xcf   : > { %3824 = vmatpush3.bf16.msra.mxu0 %v3821_v46  ;;  %v663_v46 = vld [vmem:[#allocation8 + $0x1a8] sm:$0xff]  ;;  %v874_v38 = vld [vmem:[#allocation8 + $0x2d0] sm:$0xff] }
  0xd0   : > { %3826 = vmatprep.subr.bf16.mxu0 %v3825_v53  ;;  %3788 = vmatpush3.bf16.msra.mxu1 %v3785_v7  ;;  %v3865_v47 = vpack.c.bf16 %v663_v46, %v662_v45  ;;  %v879_v45 = vld [vmem:[#allocation8 + $0x2f8] sm:$0xff] }
  0xd1   : > { %3790 = vmatprep.subr.bf16.mxu1 %v3789_v15 }
  0xd2   : > { %3129 = vmatmul.mubr.f32.vlgmr.msra.gmra.mrb[0].mxu0 %v464_v59  ;;  %v3881_v59 = vpack.c.bf16 %v671_v58, %v670_v57 }
  0xd3   : > { %3828 = vmatpush3.bf16.msra.mxu0 %v3825_v53  ;;  %3163 = vmatprep.mubr.f32.mxu0 %v5157_v19  ;;  %v3873_v53 = vpack.c.bf16 %v667_v52, %v666_v51  ;;  %v2686_v52 = vld [vmem:[#allocation10] ss:$0 sm:$0xff] }
  0xd4   : > { %3830 = vmatprep.subr.bf16.mxu0 %v3829_v60  ;;  %3792 = vmatpush3.bf16.msra.mxu1 %v3789_v15  ;;  %v761_v15 = vld [vmem:[#allocation8 + $0x238] sm:$0xff] }
  0xd5   : > { %3922 = vmatprep.subr.bf16.mxu1 %v3921_v23  ;;  %v3901_v16 = vpack.c.bf16 %v761_v15, %v760_v12  ;;  %v1365_v12 = vld [vmem:[#allocation8 + $0x508] sm:$0xff]  ;;  %v1366_v15 = vld [vmem:[#allocation8 + $0x510] sm:$0xff] }
  0xd7   : > { %3832 = vmatpush3.bf16.msra.mxu0 %v3829_v60  ;;  %3094 = vmatmul.mubr.f32.vlgmr.msra.gmra.mrb[0].mxu1 %v363_v27  ;;  %v672_v60 = vld [vmem:[#allocation8 + $0x1f0] sm:$0xff] }
  0xd8   : > { %3834 = vmatprep.subr.bf16.mxu0 %v3833_v4  ;;  %3924 = vmatpush3.bf16.msra.mxu1 %v3921_v23  ;;  %v3885_v62 = vpack.c.bf16 %v673_v61, %v672_v60  ;;  %v765_v23 = vld [vmem:[#allocation8 + $0x258] sm:$0xff] }
  0xd9   : > { %3926 = vmatprep.subr.bf16.mxu1 %v3925_v30  ;;  %v3909_v24 = vpack.c.bf16 %v765_v23, %v764_v22  ;;  %v1368_v22 = vld [vmem:[#allocation8 + $0x520] sm:$0xff]  ;;  %v1369_v23 = vld [vmem:[#allocation8 + $0x528] sm:$0xff] }
  0xdb   : > { %3836 = vmatpush3.bf16.msra.mxu0 %v3833_v4  ;;  %v756_v4 = vld [vmem:[#allocation8 + $0x210] sm:$0xff] }
  0xdc   : > { %3838 = vmatprep.subr.bf16.mxu0 %v3837_v10  ;;  %3928 = vmatpush3.bf16.msra.mxu1 %v3925_v30  ;;  %v3893_v7 = vpack.c.bf16 %v757_v5, %v756_v4  ;;  %v3917_v30 = vpack.c.bf16 %v769_v29, %v768_v28  ;;  %v968_v5 = vld [vmem:[#allocation8 + $0x310] sm:$0xff]  ;;  %v1371_v29 = vld [vmem:[#allocation8 + $0x538] sm:$0xff] }
  0xdd   : > { %3930 = vmatprep.subr.bf16.mxu1 %v3929_v36  ;;  %v1370_v28 = vld [vmem:[#allocation8 + $0x530] sm:$0xff] }
  0xdf   : > { %3840 = vmatpush3.bf16.msra.mxu0 %v3837_v10  ;;  %v759_v10 = vld [vmem:[#allocation8 + $0x228] sm:$0xff] }
  0xe0   : > { %3842 = vmatprep.subr.bf16.mxu0 %v3841_v18  ;;  %3932 = vmatpush3.bf16.msra.mxu1 %v3929_v36  ;;  %v3897_v11 = vpack.c.bf16 %v759_v10, %v758_v9  ;;  %v873_v36 = vld [vmem:[#allocation8 + $0x2c8] sm:$0xff]  ;;  %v970_v10 = vld [vmem:[#allocation8 + $0x320] sm:$0xff] }
  0xe3   : > { %3844 = vmatpush3.bf16.msra.mxu0 %v3841_v18  ;;  %v763_v18 = vld [vmem:[#allocation8 + $0x248] sm:$0xff] }
  0xe4   : > { %3846 = vmatprep.subr.bf16.mxu0 %v3845_v26  ;;  %v3905_v20 = vpack.c.bf16 %v763_v18, %v762_v17  ;;  %v1367_v17 = vld [vmem:[#allocation8 + $0x518] sm:$0xff] }
  0xe7   : > { %3848 = vmatpush3.bf16.msra.mxu0 %v3845_v26  ;;  %v767_v26 = vld [vmem:[#allocation8 + $0x268] sm:$0xff] }
  0xe8   : > { %3850 = vmatprep.subr.bf16.mxu0 %v3849_v33  ;;  %v3913_v27 = vpack.c.bf16 %v767_v26, %v766_v25  ;;  %v973_v25 = vld [vmem:[#allocation8 + $0x338] sm:$0xff]  ;;  %v4089_v26 = vpack.c.bf16 %v1369_v23, %v1368_v22  ;;  %v1166_v23 = vld [vmem:[#allocation8 + $0x440] sm:$0xff] }
  0xeb   : > { %3852 = vmatpush3.bf16.msra.mxu0 %v3849_v33  ;;  %v871_v33 = vld [vmem:[#allocation8 + $0x2b8] sm:$0xff] }
  0xec   : > { %3854 = vmatprep.subr.bf16.mxu0 %v3853_v37  ;;  %v3933_v34 = vpack.c.bf16 %v871_v33, %v870_v32  ;;  %v4093_v32 = vpack.c.bf16 %v1371_v29, %v1370_v28  ;;  %v1170_v29 = vld [vmem:[#allocation8 + $0x460] sm:$0xff] }
  0xee   : > { %3934 = vmatprep.subr.bf16.mxu1 %v3933_v34 }
  0xef   : > { %3856 = vmatpush3.bf16.msra.mxu0 %v3853_v37  ;;  %3936 = vmatpush3.bf16.msra.mxu1 %v3933_v34  ;;  %v3937_v37 = vpack.c.bf16 %v873_v36, %v872_v35  ;;  %v976_v34 = vld [vmem:[#allocation8 + $0x350] sm:$0xff]  ;;  %v977_v35 = vld [vmem:[#allocation8 + $0x358] sm:$0xff] }
  0xf0   : > { %3858 = vmatprep.subr.bf16.mxu0 %v3857_v40  ;;  %v3973_v36 = vpack.c.bf16 %v977_v35, %v976_v34  ;;  %v1254_v35 = vld [vmem:[#allocation8 + $0x480] sm:$0xff] }
  0xf1   : > { %3938 = vmatprep.subr.bf16.mxu1 %v3937_v37 }
  0xf2   : > { %3164 = vmatmul.mubr.f32.vlgmr.msra.gmra.mrb[0].mxu0 %v5161_v21 }
  0xf3   : > { %3860 = vmatpush3.bf16.msra.mxu0 %v3857_v40  ;;  %3198 = vmatprep.mubr.f32.mxu0 %v655_v44  ;;  %v3941_v40 = vpack.c.bf16 %v875_v39, %v874_v38  ;;  %v878_v44 = vld [vmem:[#allocation8 + $0x2f0] sm:$0xff]  ;;  %v979_v38 = vld [vmem:[#allocation8 + $0x368] sm:$0xff] }
  0xf4   : > { %3862 = vmatprep.subr.bf16.mxu0 %v3861_v43  ;;  %3940 = vmatpush3.bf16.msra.mxu1 %v3937_v37  ;;  %v3949_v46 = vpack.c.bf16 %v879_v45, %v878_v44  ;;  %v978_v37 = vld [vmem:[#allocation8 + $0x360] sm:$0xff]  ;;  %v1063_v44 = vld [vmem:[#allocation8 + $0x388] sm:$0xff] }
  0xf5   : > { %3942 = vmatprep.subr.bf16.mxu1 %v3941_v40  ;;  %v3977_v39 = vpack.c.bf16 %v979_v38, %v978_v37  ;;  %v1256_v38 = vld [vmem:[#allocation8 + $0x490] sm:$0xff] }
  0xf7   : > { %3864 = vmatpush3.bf16.msra.mxu0 %v3861_v43  ;;  %v3945_v43 = vpack.c.bf16 %v877_v42, %v876_v41  ;;  %v981_v41 = vld [vmem:[#allocation8 + $0x378] sm:$0xff] }
  0xf8   : > { %3866 = vmatprep.subr.bf16.mxu0 %v3865_v47  ;;  %3944 = vmatpush3.bf16.msra.mxu1 %v3941_v40  ;;  %v980_v40 = vld [vmem:[#allocation8 + $0x370] sm:$0xff] }
  0xf9   : > { %3946 = vmatprep.subr.bf16.mxu1 %v3945_v43  ;;  %v3981_v42 = vpack.c.bf16 %v981_v41, %v980_v40 }
  0xfb   : > { %3868 = vmatpush3.bf16.msra.mxu0 %v3865_v47  ;;  %v966_v47 = vld [vmem:[#allocation8 + $0x300] sm:$0xff] }
  0xfc   : > { %3870 = vmatprep.subr.bf16.mxu0 %v3869_v50  ;;  %3948 = vmatpush3.bf16.msra.mxu1 %v3945_v43  ;;  %v3953_v49 = vpack.c.bf16 %v967_v48, %v966_v47  ;;  %v1062_v43 = vld [vmem:[#allocation8 + $0x380] sm:$0xff]  ;;  %v1065_v47 = vld [vmem:[#allocation8 + $0x398] sm:$0xff] }
  0xfd   : > { %3950 = vmatprep.subr.bf16.mxu1 %v3949_v46  ;;  %v3985_v45 = vpack.c.bf16 %v1063_v44, %v1062_v43  ;;  %v1259_v43 = vld [vmem:[#allocation8 + $0x4a8] sm:$0xff] }
  0xff   : > { %3872 = vmatpush3.bf16.msra.mxu0 %v3869_v50 }
 0x100   : > { %3874 = vmatprep.subr.bf16.mxu0 %v3873_v53  ;;  %3952 = vmatpush3.bf16.msra.mxu1 %v3949_v46  ;;  %v1064_v46 = vld [vmem:[#allocation8 + $0x390] sm:$0xff] }
 0x101   : > { %3954 = vmatprep.subr.bf16.mxu1 %v3953_v49  ;;  %v3989_v48 = vpack.c.bf16 %v1065_v47, %v1064_v46  ;;  %v1260_v46 = vld [vmem:[#allocation8 + $0x4b0] sm:$0xff]  ;;  %v1261_v47 = vld [vmem:[#allocation8 + $0x4b8] sm:$0xff] }
 0x103   : > { %3876 = vmatpush3.bf16.msra.mxu0 %v3873_v53 }
 0x104   : > { %3878 = vmatprep.subr.bf16.mxu0 %v3877_v56 }
 0x107   : > { %3880 = vmatpush3.bf16.msra.mxu0 %v3877_v56 }
 0x108   : > { %3882 = vmatprep.subr.bf16.mxu0 %v3881_v59 }
 0x10b   : > { %3884 = vmatpush3.bf16.msra.mxu0 %v3881_v59 }
 0x10c   : > { %3886 = vmatprep.subr.bf16.mxu0 %v3885_v62 }
 0x10f   : > { %3888 = vmatpush3.bf16.msra.mxu0 %v3885_v62 }
 0x110   : > { %3890 = vmatprep.subr.bf16.mxu0 %v3889_v3 }
 0x112   : > { %3199 = vmatmul.mubr.f32.vlgmr.msra.gmra.mrb[0].mxu0 %v656_v6  ;;  %v969_v6 = vld [vmem:[#allocation8 + $0x318] sm:$0xff] }
 0x113   : > { %3892 = vmatpush3.bf16.msra.mxu0 %v3889_v3  ;;  %3233 = vmatprep.mubr.f32.mxu0 %v751_v8  ;;  %v3957_v9 = vpack.c.bf16 %v969_v6, %v968_v5  ;;  %v1076_v5 = vld [vmem:[#allocation8 + $0x3f0] sm:$0xff]  ;;  %v1077_v6 = vld [vmem:[#allocation8 + $0x3f8] sm:$0xff] }
 0x114   : > { %3894 = vmatprep.subr.bf16.mxu0 %v3893_v7 }
 0x117   : > { %3896 = vmatpush3.bf16.msra.mxu0 %v3893_v7 }
 0x118   : > { %3898 = vmatprep.subr.bf16.mxu0 %v3897_v11 }
 0x11b   : > { %3900 = vmatpush3.bf16.msra.mxu0 %v3897_v11  ;;  %v971_v11 = vld [vmem:[#allocation8 + $0x328] sm:$0xff] }
 0x11c   : > { %3902 = vmatprep.subr.bf16.mxu0 %v3901_v16  ;;  %v3961_v18 = vpack.c.bf16 %v971_v11, %v970_v10  ;;  %v1160_v10 = vld [vmem:[#allocation8 + $0x410] sm:$0xff]  ;;  %v1161_v11 = vld [vmem:[#allocation8 + $0x418] sm:$0xff] }
 0x11f   : > { %3904 = vmatpush3.bf16.msra.mxu0 %v3901_v16 }
 0x120   : > { %3906 = vmatprep.subr.bf16.mxu0 %v3905_v20 }
 0x123   : > { %3908 = vmatpush3.bf16.msra.mxu0 %v3905_v20  ;;  %v4085_v20 = vpack.c.bf16 %v1367_v17, %v1366_v15  ;;  %v1163_v15 = vld [vmem:[#allocation8 + $0x428] sm:$0xff] }
 0x124   : > { %3910 = vmatprep.subr.bf16.mxu0 %v3909_v24 }
 0x127   : > { %3912 = vmatpush3.bf16.msra.mxu0 %v3909_v24  ;;  %v972_v24 = vld [vmem:[#allocation8 + $0x330] sm:$0xff] }
 0x128   : > { %3914 = vmatprep.subr.bf16.mxu0 %v3913_v27 }
 0x12b   : > { %3916 = vmatpush3.bf16.msra.mxu0 %v3913_v27  ;;  %v3965_v27 = vpack.c.bf16 %v973_v25, %v972_v24  ;;  %v1167_v24 = vld [vmem:[#allocation8 + $0x448] sm:$0xff] }
 0x12c   : > { %3918 = vmatprep.subr.bf16.mxu0 %v3917_v30  ;;  %v4033_v25 = vpack.c.bf16 %v1167_v24, %v1166_v23 }
 0x12f   : > { %3920 = vmatpush3.bf16.msra.mxu0 %v3917_v30  ;;  %v974_v30 = vld [vmem:[#allocation8 + $0x340] sm:$0xff] }
 0x132   : > { %3234 = vmatmul.mubr.f32.vlgmr.msra.gmra.mrb[0].mxu0 %v752_v31  ;;  %v975_v31 = vld [vmem:[#allocation8 + $0x348] sm:$0xff] }
 0x133   : > { %v3969_v33 = vpack.c.bf16 %v975_v31, %v974_v30  ;;  %v1171_v30 = vld [vmem:[#allocation8 + $0x468] sm:$0xff] }
 0x134   : > { %v4041_v31 = vpack.c.bf16 %v1171_v30, %v1170_v29 }
 0x1aa   : > { %v3095_v50 = vpop.f32.mrb[0].mxu1 }
 0x1ab   : > { %v446_v51 = vpop.f32.mrb[1].mxu1  ;;  %v462_v53 = vadd.f32 %v3095_v50, %v2686_v52  ;;  %v1066_v50 = vld [vmem:[#allocation8 + $0x3a0] sm:$0xff] }
 0x1ac   : > { %v461_v54 = vadd.f32 %v2686_v52, %v446_v51  ;;  %v1067_v51 = vld [vmem:[#allocation8 + $0x3a8] sm:$0xff] }
 0x1ad   : > { %v3993_v52 = vpack.c.bf16 %v1067_v51, %v1066_v50  ;;  %v1263_v50 = vld [vmem:[#allocation8 + $0x4c8] sm:$0xff] }
 0x205   : > { %v3235_v55 = vpop.f32.mrb[0].mxu0 }
 0x206   : > { %v4434_v56 = vadd.f32 %v3235_v55, %v462_v53  ;;  %v836_v57 = vpop.f32.mrb[1].mxu0  ;;  %v1068_v53 = vld [vmem:[#allocation8 + $0x3b0] sm:$0xff] }
 0x207   : > { %v4436_v58 = vadd.f32 %v836_v57, %v461_v54  ;;  %v1069_v54 = vld [vmem:[#allocation8 + $0x3b8] sm:$0xff]  ;;  %v1071_v57 = vld [vmem:[#allocation8 + $0x3c8] sm:$0xff] }
 0x208   : > { %vm848_vm2 = vcmp.gt.f32.partialorder %v4434_v56, 0.0  ;;  %v850_v59 = vmul.f32 0.1, %v4434_v56  ;;  %v3997_v55 = vpack.c.bf16 %v1069_v54, %v1068_v53  ;;  %v1265_v53 = vld [vmem:[#allocation8 + $0x4d8] sm:$0xff] }
 0x209   : > { %vm847_vm3 = vcmp.gt.f32.partialorder %v4436_v58, 0.0  ;;  %v849_v60 = vmul.f32 0.1, %v4436_v58 }
 0x20a   : > { %v852_v61 = vsel %vm848_vm2, %v4434_v56, %v850_v59  ;;  %v1070_v56 = vld [vmem:[#allocation8 + $0x3c0] sm:$0xff]  ;;  %v1072_v59 = vld [vmem:[#allocation8 + $0x3d0] sm:$0xff] }
 0x20b   : > { %v854_v62 = vadd.f32 %v852_v61, %v5161_v21  ;;  %v851_v63 = vsel %vm847_vm3, %v4436_v58, %v849_v60  ;;  %v4001_v58 = vpack.c.bf16 %v1071_v57, %v1070_v56  ;;  %v1073_v60 = vld [vmem:[#allocation8 + $0x3d8] sm:$0xff]  ;;  %v1267_v56 = vld [vmem:[#allocation8 + $0x4e8] sm:$0xff] }
 0x20c   : > { %v853_v0 = vadd.f32 %v851_v63, %v5157_v19  ;;  %v1364_v19 = vld [vmem:[#allocation8 + $0x500] sm:$0xff]  ;;  %v4005_v61 = vpack.c.bf16 %v1073_v60, %v1072_v59  ;;  %v1075_v63 = vld [vmem:[#allocation8 + $0x3e8] sm:$0xff]  ;;  %v1269_v59 = vld [vmem:[#allocation8 + $0x4f8] sm:$0xff] }
 0x20d   : > { %v5170_v3 = vmul.f32 %v5153_v14, %v854_v62  ;;  %v4081_v16 = vpack.c.bf16 %v1365_v12, %v1364_v19  ;;  %v1074_v62 = vld [vmem:[#allocation8 + $0x3e0] sm:$0xff]  ;;  %v4021_v19 = vpack.c.bf16 %v1161_v11, %v1160_v10  ;;  %v1378_v10 = vld [vmem:[#allocation8 + $0x570] sm:$0xff]  ;;  %v1379_v11 = vld [vmem:[#allocation8 + $0x578] sm:$0xff] }
 0x20e   : > { %v5173_v4 = vmul.f32 %v5150_v13, %v853_v0  ;;  %v4009_v0 = vpack.c.bf16 %v1075_v63, %v1074_v62  ;;  %v1162_v12 = vld [vmem:[#allocation8 + $0x420] sm:$0xff]  ;;  %v1373_v63 = vld [vmem:[#allocation8 + $0x548] sm:$0xff] }
 0x20f   : > { %858 = vst [vmem:[#allocation2 + $0xa] sm:$0xff] %v5170_v3  ;;  %4082 = vmatprep.subr.bf16.mxu0 %v4081_v16  ;;  %v4025_v17 = vpack.c.bf16 %v1163_v15, %v1162_v12  ;;  %v1372_v62 = vld [vmem:[#allocation8 + $0x540] sm:$0xff]  ;;  %v1467_v15 = vld [vmem:[#allocation8 + $0x588] sm:$0xff] }
 0x210   : > { %857 = vst [vmem:[#allocation2 + $0x2] sm:$0xff] %v5173_v4  ;;  %4084 = vmatpush3.bf16.msra.mxu0 %v4081_v16  ;;  %v1466_v12 = vld [vmem:[#allocation8 + $0x580] sm:$0xff] }
 0x211   : > { %4086 = vmatprep.subr.bf16.mxu0 %v4085_v20 }
 0x214   : > { %4088 = vmatpush3.bf16.msra.mxu0 %v4085_v20  ;;  %v1165_v20 = vld [vmem:[#allocation8 + $0x438] sm:$0xff] }
 0x215   : > { %4090 = vmatprep.subr.bf16.mxu0 %v4089_v26 }
 0x216   : > { %v1156_v41 = vld [vmem:[#allocation2 + $0xb] sm:$0xff] }
 0x217   : > { %v861_v7 = vld [vmem:[#allocation2] sm:$0xff]  ;;  %v862_v8 = vld [vmem:[#allocation2 + $0x8] sm:$0xff] }
 0x218   : > { %3268 = vmatprep.mubr.f32.mxu1 %v861_v7  ;;  %v963_v21 = vld [vmem:[#allocation2 + $0x1] sm:$0xff]  ;;  %4092 = vmatpush3.bf16.msra.mxu0 %v4089_v26  ;;  %v4013_v7 = vpack.c.bf16 %v1077_v6, %v1076_v5  ;;  %v1375_v6 = vld [vmem:[#allocation8 + $0x558] sm:$0xff] }
 0x219   : > { %3269 = vmatmul.mubr.f32.vlgmr.msra.gmra.mrb[2].mxu1 %v862_v8  ;;  %4094 = vmatprep.subr.bf16.mxu0 %v4093_v32  ;;  %v1158_v8 = vld [vmem:[#allocation8 + $0x400] sm:$0xff]  ;;  %v1155_v16 = vld [vmem:[#allocation2 + $0x3] sm:$0xff] }
 0x21a   : > { %3956 = vmatpush3.bf16.msra.mxu1 %v3953_v49  ;;  %3303 = vmatprep.mubr.f32.mxu1 %v963_v21  ;;  %v964_v49 = vld [vmem:[#allocation2 + $0x9] sm:$0xff] }
 0x21b   : > { %3958 = vmatprep.subr.bf16.mxu1 %v3957_v9  ;;  %v1168_v26 = vld [vmem:[#allocation8 + $0x450] sm:$0xff] }
 0x21c   : > { %4096 = vmatpush3.bf16.msra.mxu0 %v4093_v32  ;;  %v1172_v32 = vld [vmem:[#allocation8 + $0x470] sm:$0xff] }
 0x21d   : > { %v1251_v44 = vld [vmem:[#allocation2 + $0x4] sm:$0xff] }
 0x21e   : > { %3960 = vmatpush3.bf16.msra.mxu1 %v3957_v9  ;;  %v1159_v9 = vld [vmem:[#allocation8 + $0x408] sm:$0xff]  ;;  %v1374_v5 = vld [vmem:[#allocation8 + $0x550] sm:$0xff] }
 0x21f   : > { %3962 = vmatprep.subr.bf16.mxu1 %v3961_v18  ;;  %v4017_v21 = vpack.c.bf16 %v1159_v9, %v1158_v8  ;;  %v1376_v8 = vld [vmem:[#allocation8 + $0x560] sm:$0xff]  ;;  %v1377_v9 = vld [vmem:[#allocation8 + $0x568] sm:$0xff] }
 0x222   : > { %3964 = vmatpush3.bf16.msra.mxu1 %v3961_v18  ;;  %v1164_v18 = vld [vmem:[#allocation8 + $0x430] sm:$0xff] }
 0x223   : > { %3966 = vmatprep.subr.bf16.mxu1 %v3965_v27  ;;  %v4029_v22 = vpack.c.bf16 %v1165_v20, %v1164_v18 }
 0x226   : > { %3968 = vmatpush3.bf16.msra.mxu1 %v3965_v27  ;;  %v1169_v27 = vld [vmem:[#allocation8 + $0x458] sm:$0xff] }
 0x227   : > { %3970 = vmatprep.subr.bf16.mxu1 %v3969_v33  ;;  %v4037_v28 = vpack.c.bf16 %v1169_v27, %v1168_v26 }
 0x22a   : > { %3972 = vmatpush3.bf16.msra.mxu1 %v3969_v33  ;;  %v1173_v33 = vld [vmem:[#allocation8 + $0x478] sm:$0xff] }
 0x22b   : > { %3974 = vmatprep.subr.bf16.mxu1 %v3973_v36  ;;  %v4045_v34 = vpack.c.bf16 %v1173_v33, %v1172_v32  ;;  %v1468_v32 = vld [vmem:[#allocation8 + $0x590] sm:$0xff]  ;;  %v1469_v33 = vld [vmem:[#allocation8 + $0x598] sm:$0xff] }
 0x22e   : > { %3976 = vmatpush3.bf16.msra.mxu1 %v3973_v36  ;;  %v1255_v36 = vld [vmem:[#allocation8 + $0x488] sm:$0xff] }
 0x22f   : > { %3978 = vmatprep.subr.bf16.mxu1 %v3977_v39  ;;  %v4049_v37 = vpack.c.bf16 %v1255_v36, %v1254_v35  ;;  %v4117_v36 = vpack.c.bf16 %v1469_v33, %v1468_v32  ;;  %v1576_v32 = vld [vmem:[#allocation8 + $0x670] sm:$0xff]  ;;  %v1577_v33 = vld [vmem:[#allocation8 + $0x678] sm:$0xff] }
 0x232   : > { %3980 = vmatpush3.bf16.msra.mxu1 %v3977_v39  ;;  %v1257_v39 = vld [vmem:[#allocation8 + $0x498] sm:$0xff] }
 0x233   : > { %3982 = vmatprep.subr.bf16.mxu1 %v3981_v42  ;;  %v4053_v40 = vpack.c.bf16 %v1257_v39, %v1256_v38  ;;  %v1471_v38 = vld [vmem:[#allocation8 + $0x5a8] sm:$0xff] }
 0x234   : > { %v1865_v39 = vld [vmem:[#allocation8 + $0x788] sm:$0xff] }
 0x236   : > { %3984 = vmatpush3.bf16.msra.mxu1 %v3981_v42  ;;  %v1258_v42 = vld [vmem:[#allocation8 + $0x4a0] sm:$0xff] }
 0x237   : > { %3986 = vmatprep.subr.bf16.mxu1 %v3985_v45 }
 0x239   : > { %3304 = vmatmul.mubr.f32.vlgmr.msra.gmra.mrb[2].mxu1 %v964_v49  ;;  %v1262_v49 = vld [vmem:[#allocation8 + $0x4c0] sm:$0xff] }
 0x23a   : > { %3988 = vmatpush3.bf16.msra.mxu1 %v3985_v45  ;;  %3338 = vmatprep.mubr.f32.mxu1 %v5173_v4  ;;  %v4057_v45 = vpack.c.bf16 %v1259_v43, %v1258_v42  ;;  %v4065_v51 = vpack.c.bf16 %v1263_v50, %v1262_v49  ;;  %v1867_v42 = vld [vmem:[#allocation8 + $0x798] sm:$0xff] }
 0x23b   : > { %3990 = vmatprep.subr.bf16.mxu1 %v3989_v48 }
 0x23e   : > { %3992 = vmatpush3.bf16.msra.mxu1 %v3989_v48  ;;  %v4061_v48 = vpack.c.bf16 %v1261_v47, %v1260_v46  ;;  %v1869_v46 = vld [vmem:[#allocation8 + $0x7a8] sm:$0xff]  ;;  %v1472_v47 = vld [vmem:[#allocation8 + $0x5b0] sm:$0xff] }
 0x23f   : > { %3994 = vmatprep.subr.bf16.mxu1 %v3993_v52 }
 0x242   : > { %3996 = vmatpush3.bf16.msra.mxu1 %v3993_v52  ;;  %v1264_v52 = vld [vmem:[#allocation8 + $0x4d0] sm:$0xff] }
 0x243   : > { %3998 = vmatprep.subr.bf16.mxu1 %v3997_v55  ;;  %v4069_v54 = vpack.c.bf16 %v1265_v53, %v1264_v52  ;;  %v1871_v52 = vld [vmem:[#allocation8 + $0x7b8] sm:$0xff]  ;;  %v1474_v53 = vld [vmem:[#allocation8 + $0x5c0] sm:$0xff] }
 0x246   : > { %4000 = vmatpush3.bf16.msra.mxu1 %v3997_v55  ;;  %v1266_v55 = vld [vmem:[#allocation8 + $0x4e0] sm:$0xff] }
 0x247   : > { %4002 = vmatprep.subr.bf16.mxu1 %v4001_v58  ;;  %v4073_v57 = vpack.c.bf16 %v1267_v56, %v1266_v55 }
 0x24a   : > { %4004 = vmatpush3.bf16.msra.mxu1 %v4001_v58  ;;  %v1268_v58 = vld [vmem:[#allocation8 + $0x4f0] sm:$0xff] }
 0x24b   : > { %4006 = vmatprep.subr.bf16.mxu1 %v4005_v61  ;;  %v4077_v60 = vpack.c.bf16 %v1269_v59, %v1268_v58  ;;  %v1477_v58 = vld [vmem:[#allocation8 + $0x5d8] sm:$0xff] }
 0x24e   : > { %4008 = vmatpush3.bf16.msra.mxu1 %v4005_v61  ;;  %v1252_v61 = vld [vmem:[#allocation2 + $0xc] sm:$0xff] }
 0x24f   : > { %4010 = vmatprep.subr.bf16.mxu1 %v4009_v0 }
 0x252   : > { %4012 = vmatpush3.bf16.msra.mxu1 %v4009_v0  ;;  %v4097_v0 = vpack.c.bf16 %v1373_v63, %v1372_v62  ;;  %v1480_v63 = vld [vmem:[#allocation8 + $0x5f0] sm:$0xff] }
 0x253   : > { %4014 = vmatprep.subr.bf16.mxu1 %v4013_v7 }
 0x254   : > { %4098 = vmatprep.subr.bf16.mxu0 %v4097_v0 }
 0x255   : > { %4100 = vmatpush3.bf16.msra.mxu0 %v4097_v0  ;;  %v1481_v0 = vld [vmem:[#allocation8 + $0x5f8] sm:$0xff] }
 0x256   : > { %4016 = vmatpush3.bf16.msra.mxu1 %v4013_v7  ;;  %v4101_v7 = vpack.c.bf16 %v1375_v6, %v1374_v5  ;;  %v4141_v5 = vpack.c.bf16 %v1481_v0, %v1480_v63  ;;  %v1562_v6 = vld [vmem:[#allocation8 + $0x600] sm:$0xff] }
 0x257   : > { %4018 = vmatprep.subr.bf16.mxu1 %v4017_v21 }
 0x258   : > { %4102 = vmatprep.subr.bf16.mxu0 %v4101_v7 }
 0x259   : > { %3339 = vmatmul.mubr.f32.vlgmr.msra.gmra.mrb[2].mxu1 %v5170_v3  ;;  %4104 = vmatpush3.bf16.msra.mxu0 %v4101_v7  ;;  %v1563_v7 = vld [vmem:[#allocation8 + $0x608] sm:$0xff] }
 0x25a   : > { %4020 = vmatpush3.bf16.msra.mxu1 %v4017_v21  ;;  %3373 = vmatprep.mubr.f32.mxu1 %v1155_v16  ;;  %v4105_v21 = vpack.c.bf16 %v1377_v9, %v1376_v8  ;;  %v4113_v16 = vpack.c.bf16 %v1467_v15, %v1466_v12  ;;  %v4145_v8 = vpack.c.bf16 %v1563_v7, %v1562_v6  ;;  %v1564_v9 = vld [vmem:[#allocation8 + $0x610] sm:$0xff]  ;;  %v1567_v12 = vld [vmem:[#allocation8 + $0x628] sm:$0xff] }
 0x25b   : > { %4022 = vmatprep.subr.bf16.mxu1 %v4021_v19  ;;  %v1759_v6 = vld [vmem:[#allocation8 + $0x728] sm:$0xff] }
 0x25c   : > { %4106 = vmatprep.subr.bf16.mxu0 %v4105_v21 }
 0x25d   : > { %4108 = vmatpush3.bf16.msra.mxu0 %v4105_v21  ;;  %v1565_v21 = vld [vmem:[#allocation8 + $0x618] sm:$0xff] }
 0x25e   : > { %4024 = vmatpush3.bf16.msra.mxu1 %v4021_v19  ;;  %v4109_v19 = vpack.c.bf16 %v1379_v11, %v1378_v10  ;;  %v4149_v10 = vpack.c.bf16 %v1565_v21, %v1564_v9  ;;  %v1760_v9 = vld [vmem:[#allocation8 + $0x730] sm:$0xff]  ;;  %v1761_v21 = vld [vmem:[#allocation8 + $0x738] sm:$0xff] }
 0x25f   : > { %4026 = vmatprep.subr.bf16.mxu1 %v4025_v17 }
 0x260   : > { %4110 = vmatprep.subr.bf16.mxu0 %v4109_v19 }
 0x261   : > { %4112 = vmatpush3.bf16.msra.mxu0 %v4109_v19  ;;  %v1566_v19 = vld [vmem:[#allocation8 + $0x620] sm:$0xff] }
 0x262   : > { %4028 = vmatpush3.bf16.msra.mxu1 %v4025_v17  ;;  %4114 = vmatprep.subr.bf16.mxu0 %v4113_v16  ;;  %v2687_v17 = vld [vmem:[#allocation10 + $0x1] ss:$0 sm:$0xff]  ;;  %v4153_v15 = vpack.c.bf16 %v1567_v12, %v1566_v19  ;;  %v1763_v19 = vld [vmem:[#allocation8 + $0x748] sm:$0xff] }
 0x263   : > { %4030 = vmatprep.subr.bf16.mxu1 %v4029_v22 }
 0x266   : > { %4032 = vmatpush3.bf16.msra.mxu1 %v4029_v22 }
 0x267   : > { %4034 = vmatprep.subr.bf16.mxu1 %v4033_v25 }
 0x26a   : > { %4036 = vmatpush3.bf16.msra.mxu1 %v4033_v25 }
 0x26b   : > { %4038 = vmatprep.subr.bf16.mxu1 %v4037_v28 }
 0x26e   : > { %4040 = vmatpush3.bf16.msra.mxu1 %v4037_v28 }
 0x26f   : > { %4042 = vmatprep.subr.bf16.mxu1 %v4041_v31 }
 0x272   : > { %4044 = vmatpush3.bf16.msra.mxu1 %v4041_v31 }
 0x273   : > { %4046 = vmatprep.subr.bf16.mxu1 %v4045_v34 }
 0x276   : > { %4048 = vmatpush3.bf16.msra.mxu1 %v4045_v34 }
 0x277   : > { %4050 = vmatprep.subr.bf16.mxu1 %v4049_v37 }
 0x279   : > { %3374 = vmatmul.mubr.f32.vlgmr.msra.gmra.mrb[2].mxu1 %v1156_v41 }
 0x27a   : > { %4052 = vmatpush3.bf16.msra.mxu1 %v4049_v37  ;;  %3408 = vmatprep.mubr.f32.mxu1 %v1251_v44  ;;  %v1470_v37 = vld [vmem:[#allocation8 + $0x5a0] sm:$0xff] }
 0x27b   : > { %4054 = vmatprep.subr.bf16.mxu1 %v4053_v40  ;;  %v4121_v43 = vpack.c.bf16 %v1471_v38, %v1470_v37  ;;  %v1660_v37 = vld [vmem:[#allocation8 + $0x690] sm:$0xff]  ;;  %v1661_v38 = vld [vmem:[#allocation8 + $0x698] sm:$0xff] }
 0x27e   : > { %4056 = vmatpush3.bf16.msra.mxu1 %v4053_v40  ;;  %v1866_v40 = vld [vmem:[#allocation8 + $0x790] sm:$0xff] }
 0x27f   : > { %4058 = vmatprep.subr.bf16.mxu1 %v4057_v45  ;;  %v4245_v44 = vpack.c.bf16 %v1867_v42, %v1866_v40  ;;  %v1663_v40 = vld [vmem:[#allocation8 + $0x6a8] sm:$0xff] }
 0x282   : > { %4060 = vmatpush3.bf16.msra.mxu1 %v4057_v45  ;;  %v1868_v45 = vld [vmem:[#allocation8 + $0x7a0] sm:$0xff] }
 0x283   : > { %4062 = vmatprep.subr.bf16.mxu1 %v4061_v48  ;;  %v4249_v49 = vpack.c.bf16 %v1869_v46, %v1868_v45  ;;  %v1666_v46 = vld [vmem:[#allocation8 + $0x6c0] sm:$0xff] }
 0x286   : > { %4064 = vmatpush3.bf16.msra.mxu1 %v4061_v48  ;;  %v1473_v48 = vld [vmem:[#allocation8 + $0x5b8] sm:$0xff] }
 0x287   : > { %4066 = vmatprep.subr.bf16.mxu1 %v4065_v51  ;;  %v4125_v50 = vpack.c.bf16 %v1473_v48, %v1472_v47  ;;  %v1667_v47 = vld [vmem:[#allocation8 + $0x6c8] sm:$0xff] }
 0x288   : > { %v4193_v48 = vpack.c.bf16 %v1667_v47, %v1666_v46 }
 0x28a   : > { %4068 = vmatpush3.bf16.msra.mxu1 %v4065_v51  ;;  %v1870_v51 = vld [vmem:[#allocation8 + $0x7b0] sm:$0xff] }
 0x28b   : > { %4070 = vmatprep.subr.bf16.mxu1 %v4069_v54  ;;  %v4253_v55 = vpack.c.bf16 %v1871_v52, %v1870_v51  ;;  %v1670_v52 = vld [vmem:[#allocation8 + $0x6e0] sm:$0xff] }
 0x28e   : > { %4072 = vmatpush3.bf16.msra.mxu1 %v4069_v54  ;;  %v1475_v54 = vld [vmem:[#allocation8 + $0x5c8] sm:$0xff] }
 0x28f   : > { %4074 = vmatprep.subr.bf16.mxu1 %v4073_v57  ;;  %v4129_v56 = vpack.c.bf16 %v1475_v54, %v1474_v53  ;;  %v1671_v53 = vld [vmem:[#allocation8 + $0x6e8] sm:$0xff] }
 0x290   : > { %v4201_v54 = vpack.c.bf16 %v1671_v53, %v1670_v52 }
 0x292   : > { %4076 = vmatpush3.bf16.msra.mxu1 %v4073_v57  ;;  %v1476_v57 = vld [vmem:[#allocation8 + $0x5d0] sm:$0xff] }
 0x293   : > { %4078 = vmatprep.subr.bf16.mxu1 %v4077_v60  ;;  %v4133_v59 = vpack.c.bf16 %v1477_v58, %v1476_v57  ;;  %v1754_v58 = vld [vmem:[#allocation8 + $0x700] sm:$0xff] }
 0x296   : > { %4080 = vmatpush3.bf16.msra.mxu1 %v4077_v60  ;;  %v1478_v60 = vld [vmem:[#allocation8 + $0x5e0] sm:$0xff] }
 0x299   : > { %3409 = vmatmul.mubr.f32.vlgmr.msra.gmra.mrb[2].mxu1 %v1252_v61  ;;  %v1479_v61 = vld [vmem:[#allocation8 + $0x5e8] sm:$0xff] }
 0x29a   : > { %v4137_v62 = vpack.c.bf16 %v1479_v61, %v1478_v60  ;;  %v1756_v61 = vld [vmem:[#allocation8 + $0x710] sm:$0xff] }
 0x36c   : > { %v3410_v18 = vpop.f32.mrb[2].mxu1 }
 0x36d   : > { %v4437_v20 = vadd.f32 %v3410_v18, %v2687_v17  ;;  %v1336_v22 = vpop.f32.mrb[3].mxu1 }
 0x36e   : > { %v4438_v23 = vadd.f32 %v2687_v17, %v1336_v22  ;;  %v1569_v17 = vld [vmem:[#allocation8 + $0x638] sm:$0xff]  ;;  %v1571_v22 = vld [vmem:[#allocation8 + $0x648] sm:$0xff] }
 0x36f   : > { %vm1348_vm4 = vcmp.gt.f32.partialorder %v4437_v20, 0.0  ;;  %v1350_v24 = vmul.f32 0.1, %v4437_v20 }
 0x370   : > { %vm1347_vm5 = vcmp.gt.f32.partialorder %v4438_v23, 0.0  ;;  %v1349_v25 = vmul.f32 0.1, %v4438_v23 }
 0x371   : > { %v1352_v26 = vsel %vm1348_vm4, %v4437_v20, %v1350_v24  ;;  %v1570_v20 = vld [vmem:[#allocation8 + $0x640] sm:$0xff]  ;;  %v1572_v24 = vld [vmem:[#allocation8 + $0x650] sm:$0xff] }
 0x372   : > { %v1354_v27 = vadd.f32 %v1352_v26, %v5170_v3  ;;  %v1351_v28 = vsel %vm1347_vm5, %v4438_v23, %v1349_v25  ;;  %v4161_v23 = vpack.c.bf16 %v1571_v22, %v1570_v20  ;;  %v1573_v25 = vld [vmem:[#allocation8 + $0x658] sm:$0xff]  ;;  %v1767_v20 = vld [vmem:[#allocation8 + $0x768] sm:$0xff] }
 0x373   : > { %v1353_v29 = vadd.f32 %v1351_v28, %v5173_v4  ;;  %v1864_v4 = vld [vmem:[#allocation8 + $0x780] sm:$0xff]  ;;  %v4165_v26 = vpack.c.bf16 %v1573_v25, %v1572_v24  ;;  %v1575_v28 = vld [vmem:[#allocation8 + $0x668] sm:$0xff]  ;;  %v1769_v24 = vld [vmem:[#allocation8 + $0x778] sm:$0xff] }
 0x374   : > { %v5182_v30 = vmul.f32 %v5153_v14, %v1354_v27  ;;  %v4241_v41 = vpack.c.bf16 %v1865_v39, %v1864_v4  ;;  %v1574_v27 = vld [vmem:[#allocation8 + $0x660] sm:$0xff]  ;;  %v4181_v4 = vpack.c.bf16 %v1661_v38, %v1660_v37  ;;  %v1878_v37 = vld [vmem:[#allocation8 + $0x7f0] sm:$0xff]  ;;  %v1879_v38 = vld [vmem:[#allocation8 + $0x7f8] sm:$0xff] }
 0x375   : > { %v5185_v31 = vmul.f32 %v5150_v13, %v1353_v29  ;;  %v4169_v29 = vpack.c.bf16 %v1575_v28, %v1574_v27  ;;  %v1662_v39 = vld [vmem:[#allocation8 + $0x6a0] sm:$0xff]  ;;  %v1873_v28 = vld [vmem:[#allocation8 + $0x7c8] sm:$0xff] }
 0x376   : > { %1358 = vst [vmem:[#allocation2 + $0xa] sm:$0xff] %v5182_v30  ;;  %4242 = vmatprep.subr.bf16.mxu1 %v4241_v41  ;;  %v4185_v42 = vpack.c.bf16 %v1663_v40, %v1662_v39  ;;  %v1872_v27 = vld [vmem:[#allocation8 + $0x7c0] sm:$0xff]  ;;  %v1967_v40 = vld [vmem:[#allocation8 + $0x808] sm:$0xff] }
 0x377   : > { %1357 = vst [vmem:[#allocation2 + $0x2] sm:$0xff] %v5185_v31  ;;  %4244 = vmatpush3.bf16.msra.mxu1 %v4241_v41  ;;  %v1966_v39 = vld [vmem:[#allocation8 + $0x800] sm:$0xff] }
 0x378   : > { %4246 = vmatprep.subr.bf16.mxu1 %v4245_v44 }
 0x37b   : > { %4248 = vmatpush3.bf16.msra.mxu1 %v4245_v44  ;;  %v1665_v44 = vld [vmem:[#allocation8 + $0x6b8] sm:$0xff] }
 0x37c   : > { %4250 = vmatprep.subr.bf16.mxu1 %v4249_v49 }
 0x37d   : > { %v1656_v0 = vld [vmem:[#allocation2 + $0xb] sm:$0xff] }
 0x37e   : > { %v1361_v34 = vld [vmem:[#allocation2] sm:$0xff]  ;;  %v1362_v35 = vld [vmem:[#allocation2 + $0x8] sm:$0xff] }
 0x37f   : > { %3443 = vmatprep.mubr.f32.mxu0 %v1361_v34  ;;  %v1463_v3 = vld [vmem:[#allocation2 + $0x1] sm:$0xff]  ;;  %4252 = vmatpush3.bf16.msra.mxu1 %v4249_v49  ;;  %v1464_v11 = vld [vmem:[#allocation2 + $0x9] sm:$0xff]  ;;  %v4173_v34 = vpack.c.bf16 %v1577_v33, %v1576_v32 }
 0x380   : > { %3444 = vmatmul.mubr.f32.vlgmr.msra.gmra.mrb[2].mxu0 %v1362_v35  ;;  %4254 = vmatprep.subr.bf16.mxu1 %v4253_v55  ;;  %v1658_v35 = vld [vmem:[#allocation8 + $0x680] sm:$0xff]  ;;  %v1655_v41 = vld [vmem:[#allocation2 + $0x3] sm:$0xff]  ;;  %v1875_v33 = vld [vmem:[#allocation8 + $0x7d8] sm:$0xff] }
 0x381   : > { %4116 = vmatpush3.bf16.msra.mxu0 %v4113_v16  ;;  %3478 = vmatprep.mubr.f32.mxu0 %v1463_v3  ;;  %v1568_v16 = vld [vmem:[#allocation8 + $0x630] sm:$0xff] }
 0x382   : > { %4118 = vmatprep.subr.bf16.mxu0 %v4117_v36  ;;  %v4157_v18 = vpack.c.bf16 %v1569_v17, %v1568_v16  ;;  %v1668_v49 = vld [vmem:[#allocation8 + $0x6d0] sm:$0xff]  ;;  %v1765_v16 = vld [vmem:[#allocation8 + $0x758] sm:$0xff] }
 0x383   : > { %4256 = vmatpush3.bf16.msra.mxu1 %v4253_v55  ;;  %v1672_v55 = vld [vmem:[#allocation8 + $0x6f0] sm:$0xff] }
 0x384   : > { %v1751_v7 = vld [vmem:[#allocation2 + $0x4] sm:$0xff] }
 0x385   : > { %4120 = vmatpush3.bf16.msra.mxu0 %v4117_v36  ;;  %v1659_v36 = vld [vmem:[#allocation8 + $0x688] sm:$0xff]  ;;  %v1874_v32 = vld [vmem:[#allocation8 + $0x7d0] sm:$0xff] }
 0x386   : > { %4122 = vmatprep.subr.bf16.mxu0 %v4121_v43  ;;  %v4177_v3 = vpack.c.bf16 %v1659_v36, %v1658_v35  ;;  %v1876_v35 = vld [vmem:[#allocation8 + $0x7e0] sm:$0xff]  ;;  %v1877_v36 = vld [vmem:[#allocation8 + $0x7e8] sm:$0xff] }
 0x389   : > { %4124 = vmatpush3.bf16.msra.mxu0 %v4121_v43  ;;  %v1664_v43 = vld [vmem:[#allocation8 + $0x6b0] sm:$0xff] }
 0x38a   : > { %4126 = vmatprep.subr.bf16.mxu0 %v4125_v50  ;;  %v4189_v45 = vpack.c.bf16 %v1665_v44, %v1664_v43 }
 0x38d   : > { %4128 = vmatpush3.bf16.msra.mxu0 %v4125_v50  ;;  %v1669_v50 = vld [vmem:[#allocation8 + $0x6d8] sm:$0xff] }
 0x38e   : > { %4130 = vmatprep.subr.bf16.mxu0 %v4129_v56  ;;  %v4197_v51 = vpack.c.bf16 %v1669_v50, %v1668_v49 }
 0x391   : > { %4132 = vmatpush3.bf16.msra.mxu0 %v4129_v56  ;;  %v1673_v56 = vld [vmem:[#allocation8 + $0x6f8] sm:$0xff] }
 0x392   : > { %4134 = vmatprep.subr.bf16.mxu0 %v4133_v59  ;;  %v4205_v57 = vpack.c.bf16 %v1673_v56, %v1672_v55  ;;  %v1968_v55 = vld [vmem:[#allocation8 + $0x810] sm:$0xff]  ;;  %v1969_v56 = vld [vmem:[#allocation8 + $0x818] sm:$0xff] }
 0x395   : > { %4136 = vmatpush3.bf16.msra.mxu0 %v4133_v59  ;;  %v1755_v59 = vld [vmem:[#allocation8 + $0x708] sm:$0xff] }
 0x396   : > { %4138 = vmatprep.subr.bf16.mxu0 %v4137_v62  ;;  %v4209_v60 = vpack.c.bf16 %v1755_v59, %v1754_v58  ;;  %v4277_v59 = vpack.c.bf16 %v1969_v56, %v1968_v55  ;;  %v2063_v55 = vld [vmem:[#allocation8 + $0x888] sm:$0xff] }
 0x399   : > { %4140 = vmatpush3.bf16.msra.mxu0 %v4137_v62  ;;  %v1757_v62 = vld [vmem:[#allocation8 + $0x718] sm:$0xff] }
 0x39a   : > { %4142 = vmatprep.subr.bf16.mxu0 %v4141_v5  ;;  %v4213_v63 = vpack.c.bf16 %v1757_v62, %v1756_v61  ;;  %v1971_v61 = vld [vmem:[#allocation8 + $0x828] sm:$0xff]  ;;  %v2362_v62 = vld [vmem:[#allocation11 + $0x18] sm:$0xff] }
 0x39d   : > { %4144 = vmatpush3.bf16.msra.mxu0 %v4141_v5  ;;  %v1758_v5 = vld [vmem:[#allocation8 + $0x720] sm:$0xff] }
 0x39e   : > { %4146 = vmatprep.subr.bf16.mxu0 %v4145_v8 }
 0x3a0   : > { %3479 = vmatmul.mubr.f32.vlgmr.msra.gmra.mrb[2].mxu0 %v1464_v11  ;;  %v1762_v11 = vld [vmem:[#allocation8 + $0x740] sm:$0xff] }
 0x3a1   : > { %4148 = vmatpush3.bf16.msra.mxu0 %v4145_v8  ;;  %3513 = vmatprep.mubr.f32.mxu0 %v5185_v31  ;;  %v4217_v8 = vpack.c.bf16 %v1759_v6, %v1758_v5  ;;  %v4225_v12 = vpack.c.bf16 %v1763_v19, %v1762_v11  ;;  %v2361_v5 = vld [vmem:[#allocation11 + $0x10] sm:$0xff]  ;;  %v2364_v6 = vld [vmem:[#allocation11 + $0x28] sm:$0xff] }
 0x3a2   : > { %4150 = vmatprep.subr.bf16.mxu0 %v4149_v10  ;;  %v2365_v11 = vld [vmem:[#allocation11 + $0x30] sm:$0xff]  ;;  %v2368_v19 = vld [vmem:[#allocation11 + $0x48] sm:$0xff] }
 0x3a5   : > { %4152 = vmatpush3.bf16.msra.mxu0 %v4149_v10  ;;  %v4221_v10 = vpack.c.bf16 %v1761_v21, %v1760_v9 }
 0x3a6   : > { %4154 = vmatprep.subr.bf16.mxu0 %v4153_v15 }
 0x3a9   : > { %4156 = vmatpush3.bf16.msra.mxu0 %v4153_v15  ;;  %v1764_v15 = vld [vmem:[#allocation8 + $0x750] sm:$0xff] }
 0x3aa   : > { %4158 = vmatprep.subr.bf16.mxu0 %v4157_v18  ;;  %v4229_v17 = vpack.c.bf16 %v1765_v16, %v1764_v15  ;;  %v1973_v15 = vld [vmem:[#allocation8 + $0x838] sm:$0xff] }
 0x3ab   : > { %v2370_v16 = vld [vmem:[#allocation11 + $0x58] sm:$0xff] }
 0x3ad   : > { %4160 = vmatpush3.bf16.msra.mxu0 %v4157_v18  ;;  %v1766_v18 = vld [vmem:[#allocation8 + $0x760] sm:$0xff] }
 0x3ae   : > { %4162 = vmatprep.subr.bf16.mxu0 %v4161_v23  ;;  %v4233_v22 = vpack.c.bf16 %v1767_v20, %v1766_v18  ;;  %v4409_v18 = vpack.c.bf16 %v2370_v16, %v2368_v19  ;;  %v2367_v20 = vld [vmem:[#allocation11 + $0x40] sm:$0xff] }
 0x3b1   : > { %4164 = vmatpush3.bf16.msra.mxu0 %v4161_v23  ;;  %v1768_v23 = vld [vmem:[#allocation8 + $0x770] sm:$0xff] }
 0x3b2   : > { %4166 = vmatprep.subr.bf16.mxu0 %v4165_v26  ;;  %v4237_v25 = vpack.c.bf16 %v1769_v24, %v1768_v23  ;;  %v2372_v24 = vld [vmem:[#allocation11 + $0x68] sm:$0xff] }
 0x3b5   : > { %4168 = vmatpush3.bf16.msra.mxu0 %v4165_v26  ;;  %v1752_v26 = vld [vmem:[#allocation2 + $0xc] sm:$0xff] }
 0x3b6   : > { %4170 = vmatprep.subr.bf16.mxu0 %v4169_v29 }
 0x3b9   : > { %4172 = vmatpush3.bf16.msra.mxu0 %v4169_v29  ;;  %v4257_v29 = vpack.c.bf16 %v1873_v28, %v1872_v27  ;;  %v1975_v27 = vld [vmem:[#allocation8 + $0x848] sm:$0xff] }
 0x3ba   : > { %4174 = vmatprep.subr.bf16.mxu0 %v4173_v34 }
 0x3bb   : > { %4258 = vmatprep.subr.bf16.mxu1 %v4257_v29 }
 0x3bc   : > { %4260 = vmatpush3.bf16.msra.mxu1 %v4257_v29 }
 0x3bd   : > { %4176 = vmatpush3.bf16.msra.mxu0 %v4173_v34  ;;  %v4261_v34 = vpack.c.bf16 %v1875_v33, %v1874_v32  ;;  %v2371_v32 = vld [vmem:[#allocation11 + $0x60] sm:$0xff]  ;;  %v2373_v33 = vld [vmem:[#allocation11 + $0x70] sm:$0xff] }
 0x3be   : > { %4178 = vmatprep.subr.bf16.mxu0 %v4177_v3 }
 0x3bf   : > { %4262 = vmatprep.subr.bf16.mxu1 %v4261_v34 }
 0x3c0   : > { %3514 = vmatmul.mubr.f32.vlgmr.msra.gmra.mrb[2].mxu0 %v5182_v30  ;;  %4264 = vmatpush3.bf16.msra.mxu1 %v4261_v34 }
 0x3c1   : > { %4180 = vmatpush3.bf16.msra.mxu0 %v4177_v3  ;;  %3548 = vmatprep.mubr.f32.mxu0 %v1655_v41  ;;  %v4265_v3 = vpack.c.bf16 %v1877_v36, %v1876_v35  ;;  %v4273_v41 = vpack.c.bf16 %v1967_v40, %v1966_v39  ;;  %v2376_v35 = vld [vmem:[#allocation11 + $0x88] sm:$0xff]  ;;  %v2378_v36 = vld [vmem:[#allocation11 + $0x98] sm:$0xff]  ;;  %v2375_v39 = vld [vmem:[#allocation11 + $0x80] sm:$0xff] }
 0x3c2   : > { %4182 = vmatprep.subr.bf16.mxu0 %v4181_v4  ;;  %v2377_v40 = vld [vmem:[#allocation11 + $0x90] sm:$0xff] }
 0x3c3   : > { %4266 = vmatprep.subr.bf16.mxu1 %v4265_v3 }
 0x3c4   : > { %4268 = vmatpush3.bf16.msra.mxu1 %v4265_v3  ;;  %v1976_v3 = vld [vmem:[#allocation8 + $0x850] sm:$0xff] }
 0x3c5   : > { %4184 = vmatpush3.bf16.msra.mxu0 %v4181_v4  ;;  %v4269_v4 = vpack.c.bf16 %v1879_v38, %v1878_v37  ;;  %v1977_v37 = vld [vmem:[#allocation8 + $0x858] sm:$0xff]  ;;  %v4415_v38 = vpack.c.bf16 %v2373_v33, %v2371_v32 }
 0x3c6   : > { %4186 = vmatprep.subr.bf16.mxu0 %v4185_v42  ;;  %v2165_v32 = vld [vmem:[#allocation8 + $0x938] sm:$0xff] }
 0x3c7   : > { %4270 = vmatprep.subr.bf16.mxu1 %v4269_v4 }
 0x3c8   : > { %4272 = vmatpush3.bf16.msra.mxu1 %v4269_v4  ;;  %v4417_v4 = vpack.c.bf16 %v2378_v36, %v2376_v35  ;;  %v2167_v35 = vld [vmem:[#allocation8 + $0x948] sm:$0xff] }
 0x3c9   : > { %4188 = vmatpush3.bf16.msra.mxu0 %v4185_v42  ;;  %4274 = vmatprep.subr.bf16.mxu1 %v4273_v41  ;;  %v2688_v42 = vld [vmem:[#allocation10 + $0x2] ss:$0 sm:$0xff] }
 0x3ca   : > { %4190 = vmatprep.subr.bf16.mxu0 %v4189_v45 }
 0x3cd   : > { %4192 = vmatpush3.bf16.msra.mxu0 %v4189_v45 }
 0x3ce   : > { %4194 = vmatprep.subr.bf16.mxu0 %v4193_v48 }
 0x3d1   : > { %4196 = vmatpush3.bf16.msra.mxu0 %v4193_v48 }
 0x3d2   : > { %4198 = vmatprep.subr.bf16.mxu0 %v4197_v51 }
 0x3d5   : > { %4200 = vmatpush3.bf16.msra.mxu0 %v4197_v51 }
 0x3d6   : > { %4202 = vmatprep.subr.bf16.mxu0 %v4201_v54 }
 0x3d9   : > { %4204 = vmatpush3.bf16.msra.mxu0 %v4201_v54 }
 0x3da   : > { %4206 = vmatprep.subr.bf16.mxu0 %v4205_v57 }
 0x3dd   : > { %4208 = vmatpush3.bf16.msra.mxu0 %v4205_v57 }
 0x3de   : > { %4210 = vmatprep.subr.bf16.mxu0 %v4209_v60 }
 0x3e0   : > { %3549 = vmatmul.mubr.f32.vlgmr.msra.gmra.mrb[2].mxu0 %v1656_v0 }
 0x3e1   : > { %4212 = vmatpush3.bf16.msra.mxu0 %v4209_v60  ;;  %3583 = vmatprep.mubr.f32.mxu0 %v1751_v7  ;;  %v1970_v60 = vld [vmem:[#allocation8 + $0x820] sm:$0xff] }
 0x3e2   : > { %4214 = vmatprep.subr.bf16.mxu0 %v4213_v63  ;;  %v2366_v7 = vld [vmem:[#allocation11 + $0x38] sm:$0xff] }
 0x3e3   : > { %v4405_v21 = vpack.c.bf16 %v2366_v7, %v2364_v6  ;;  %v2071_v6 = vld [vmem:[#allocation8 + $0x8c8] sm:$0xff] }
 0x3e5   : > { %4216 = vmatpush3.bf16.msra.mxu0 %v4213_v63  ;;  %v2359_v63 = vld [vmem:[#allocation11] sm:$0xff] }
 0x3e6   : > { %4218 = vmatprep.subr.bf16.mxu0 %v4217_v8  ;;  %v4403_v9 = vpack.c.bf16 %v2361_v5, %v2359_v63  ;;  %v2069_v63 = vld [vmem:[#allocation8 + $0x8b8] sm:$0xff]  ;;  %v2070_v5 = vld [vmem:[#allocation8 + $0x8c0] sm:$0xff] }
 0x3e7   : > { %v4321_v7 = vpack.c.bf16 %v2071_v6, %v2070_v5  ;;  %v2267_v5 = vld [vmem:[#allocation8 + $0x9e8] sm:$0xff] }
 0x3e9   : > { %4220 = vmatpush3.bf16.msra.mxu0 %v4217_v8  ;;  %v4281_v8 = vpack.c.bf16 %v1971_v61, %v1970_v60  ;;  %v2066_v60 = vld [vmem:[#allocation8 + $0x8a0] sm:$0xff]  ;;  %v2067_v61 = vld [vmem:[#allocation8 + $0x8a8] sm:$0xff] }
 0x3ea   : > { %4222 = vmatprep.subr.bf16.mxu0 %v4221_v10 }
 0x3ed   : > { %4224 = vmatpush3.bf16.msra.mxu0 %v4221_v10  ;;  %v2363_v10 = vld [vmem:[#allocation11 + $0x20] sm:$0xff] }
 0x3ee   : > { %4226 = vmatprep.subr.bf16.mxu0 %v4225_v12 }
 0x3f1   : > { %4228 = vmatpush3.bf16.msra.mxu0 %v4225_v12  ;;  %v1972_v12 = vld [vmem:[#allocation8 + $0x830] sm:$0xff] }
 0x3f2   : > { %4230 = vmatprep.subr.bf16.mxu0 %v4229_v17  ;;  %v4285_v23 = vpack.c.bf16 %v1973_v15, %v1972_v12  ;;  %v2076_v12 = vld [vmem:[#allocation8 + $0x8f0] sm:$0xff]  ;;  %v2077_v15 = vld [vmem:[#allocation8 + $0x8f8] sm:$0xff] }
 0x3f3   : > { %v4333_v16 = vpack.c.bf16 %v2077_v15, %v2076_v12  ;;  %v2384_v12 = vld [vmem:[#allocation11 + $0xc8] sm:$0xff]  ;;  %v2386_v15 = vld [vmem:[#allocation11 + $0xd8] sm:$0xff] }
 0x3f5   : > { %4232 = vmatpush3.bf16.msra.mxu0 %v4229_v17  ;;  %v4407_v17 = vpack.c.bf16 %v2365_v11, %v2363_v10  ;;  %v2074_v10 = vld [vmem:[#allocation8 + $0x8e0] sm:$0xff]  ;;  %v2075_v11 = vld [vmem:[#allocation8 + $0x8e8] sm:$0xff] }
 0x3f6   : > { %4234 = vmatprep.subr.bf16.mxu0 %v4233_v22  ;;  %v4329_v19 = vpack.c.bf16 %v2075_v11, %v2074_v10  ;;  %v2379_v10 = vld [vmem:[#allocation11 + $0xa0] sm:$0xff]  ;;  %v2381_v11 = vld [vmem:[#allocation11 + $0xb0] sm:$0xff] }
 0x3f9   : > { %4236 = vmatpush3.bf16.msra.mxu0 %v4233_v22  ;;  %v2369_v22 = vld [vmem:[#allocation11 + $0x50] sm:$0xff] }
 0x3fa   : > { %4238 = vmatprep.subr.bf16.mxu0 %v4237_v25  ;;  %v4411_v28 = vpack.c.bf16 %v2369_v22, %v2367_v20  ;;  %v2160_v22 = vld [vmem:[#allocation8 + $0x910] sm:$0xff] }
 0x3fd   : > { %4240 = vmatpush3.bf16.msra.mxu0 %v4237_v25  ;;  %v2374_v25 = vld [vmem:[#allocation11 + $0x78] sm:$0xff] }
 0x3fe   : > { %v4413_v29 = vpack.c.bf16 %v2374_v25, %v2372_v24  ;;  %v2162_v25 = vld [vmem:[#allocation8 + $0x920] sm:$0xff] }
 0x400   : > { %3584 = vmatmul.mubr.f32.vlgmr.msra.gmra.mrb[2].mxu0 %v1752_v26  ;;  %v1974_v26 = vld [vmem:[#allocation8 + $0x840] sm:$0xff] }
 0x401   : > { %2467 = vmatprep.mubr.f32.mxu0 %v4849_v1  ;;  %v4289_v34 = vpack.c.bf16 %v1975_v27, %v1974_v26  ;;  %v2163_v26 = vld [vmem:[#allocation8 + $0x928] sm:$0xff] }
 0x4d3   : > { %v3585_v43 = vpop.f32.mrb[2].mxu0 }
 0x4d4   : > { %v4439_v44 = vadd.f32 %v3585_v43, %v2688_v42  ;;  %v1836_v45 = vpop.f32.mrb[3].mxu0  ;;  %v2382_v43 = vld [vmem:[#allocation11 + $0xb8] sm:$0xff] }
 0x4d5   : > { %v4440_v46 = vadd.f32 %v2688_v42, %v1836_v45  ;;  %v2380_v42 = vld [vmem:[#allocation11 + $0xa8] sm:$0xff] }
 0x4d6   : > { %vm1848_vm6 = vcmp.gt.f32.partialorder %v4439_v44, 0.0  ;;  %v1850_v47 = vmul.f32 0.1, %v4439_v44  ;;  %v1979_v45 = vld [vmem:[#allocation8 + $0x868] sm:$0xff] }
 0x4d7   : > { %vm1847_vm7 = vcmp.gt.f32.partialorder %v4440_v46, 0.0  ;;  %v1849_v48 = vmul.f32 0.1, %v4440_v46 }
 0x4d8   : > { %v1852_v49 = vsel %vm1848_vm6, %v4439_v44, %v1850_v47  ;;  %v1978_v44 = vld [vmem:[#allocation8 + $0x860] sm:$0xff]  ;;  %v4421_v47 = vpack.c.bf16 %v2382_v43, %v2380_v42  ;;  %v2173_v42 = vld [vmem:[#allocation8 + $0x978] sm:$0xff] }
 0x4d9   : > { %v1854_v50 = vadd.f32 %v1852_v49, %v5182_v30  ;;  %v1851_v51 = vsel %vm1847_vm7, %v4440_v46, %v1849_v48  ;;  %v4419_v46 = vpack.c.bf16 %v2377_v40, %v2375_v39  ;;  %v4297_v48 = vpack.c.bf16 %v1979_v45, %v1978_v44  ;;  %v1980_v49 = vld [vmem:[#allocation8 + $0x870] sm:$0xff]  ;;  %v2171_v39 = vld [vmem:[#allocation8 + $0x968] sm:$0xff]  ;;  %v2254_v44 = vld [vmem:[#allocation8 + $0x980] sm:$0xff] }
 0x4da   : > { %v1853_v52 = vadd.f32 %v1851_v51, %v5185_v31  ;;  %v2360_v31 = vld [vmem:[#allocation11 + $0x8] sm:$0xff] }
 0x4db   : > { %v5195_v53 = vmul.f32 %v5153_v14, %v1854_v50  ;;  %v4401_v0 = vpack.c.bf16 %v2362_v62, %v2360_v31  ;;  %v1981_v50 = vld [vmem:[#allocation8 + $0x878] sm:$0xff]  ;;  %v4313_v31 = vpack.c.bf16 %v2067_v61, %v2066_v60  ;;  %v2068_v62 = vld [vmem:[#allocation8 + $0x8b0] sm:$0xff]  ;;  %v2255_v45 = vld [vmem:[#allocation8 + $0x988] sm:$0xff] }
 0x4dc   : > { %v5198_v54 = vmul.f32 %v5150_v13, %v1853_v52  ;;  %v4301_v51 = vpack.c.bf16 %v1981_v50, %v1980_v49  ;;  %v2062_v52 = vld [vmem:[#allocation8 + $0x880] sm:$0xff]  ;;  %v2263_v60 = vld [vmem:[#allocation8 + $0x9c8] sm:$0xff] }
 0x4dd   : > { %1858 = vst [vmem:[#allocation2 + $0xa] sm:$0xff] %v5195_v53  ;;  %4402 = vmatprep.subr.bf16.mxu0 %v4401_v0  ;;  %v4305_v56 = vpack.c.bf16 %v2063_v55, %v2062_v52  ;;  %v4317_v0 = vpack.c.bf16 %v2069_v63, %v2068_v62  ;;  %v2259_v52 = vld [vmem:[#allocation8 + $0x9a8] sm:$0xff]  ;;  %v2265_v62 = vld [vmem:[#allocation8 + $0x9d8] sm:$0xff] }
 0x4de   : > { %1857 = vst [vmem:[#allocation2 + $0x2] sm:$0xff] %v5198_v54  ;;  %4404 = vmatpush1.bf16.msra.mxu0 %v4403_v9  ;;  %v2073_v9 = vld [vmem:[#allocation8 + $0x8d8] sm:$0xff] }
 0x4df   : > { %4406 = vmatprep.subr.bf16.mxu0 %v4405_v21 }
 0x4e2   : > { %4408 = vmatpush1.bf16.msra.mxu0 %v4407_v17  ;;  %v2158_v17 = vld [vmem:[#allocation8 + $0x900] sm:$0xff] }
 0x4e3   : > { %4410 = vmatprep.subr.bf16.mxu0 %v4409_v18  ;;  %v2159_v18 = vld [vmem:[#allocation8 + $0x908] sm:$0xff] }
 0x4e4   : > { %v4337_v20 = vpack.c.bf16 %v2159_v18, %v2158_v17  ;;  %v2156_v50 = vld [vmem:[#allocation2 + $0xb] sm:$0xff]  ;;  %v2383_v17 = vld [vmem:[#allocation11 + $0xc0] sm:$0xff] }
 0x4e5   : > { %v1861_v57 = vld [vmem:[#allocation2] sm:$0xff]  ;;  %v1862_v58 = vld [vmem:[#allocation2 + $0x8] sm:$0xff] }
 0x4e6   : > { %3618 = vmatprep.mubr.f32.mxu1 %v1861_v57  ;;  %v1963_v30 = vld [vmem:[#allocation2 + $0x1] sm:$0xff]  ;;  %4412 = vmatpush1.bf16.msra.mxu0 %v4411_v28  ;;  %v4345_v28 = vpack.c.bf16 %v2163_v26, %v2162_v25  ;;  %v2385_v18 = vld [vmem:[#allocation11 + $0xd0] sm:$0xff] }
 0x4e7   : > { %3619 = vmatmul.mubr.f32.vlgmr.msra.gmra.mrb[4].mxu1 %v1862_v58  ;;  %4414 = vmatprep.subr.bf16.mxu0 %v4413_v29  ;;  %v2064_v57 = vld [vmem:[#allocation8 + $0x890] sm:$0xff]  ;;  %v2065_v58 = vld [vmem:[#allocation8 + $0x898] sm:$0xff]  ;;  %v2387_v25 = vld [vmem:[#allocation11 + $0xe0] sm:$0xff] }
 0x4e8   : > { %4276 = vmatpush3.bf16.msra.mxu1 %v4273_v41  ;;  %3653 = vmatprep.mubr.f32.mxu1 %v1963_v30  ;;  %v4293_v41 = vpack.c.bf16 %v1977_v37, %v1976_v3  ;;  %v1964_v30 = vld [vmem:[#allocation2 + $0x9] sm:$0xff] }
 0x4e9   : > { %4278 = vmatprep.subr.bf16.mxu1 %v4277_v59  ;;  %v2155_v27 = vld [vmem:[#allocation2 + $0x3] sm:$0xff]  ;;  %v2169_v37 = vld [vmem:[#allocation8 + $0x958] sm:$0xff] }
 0x4ea   : > { %4416 = vmatpush1.bf16.msra.mxu0 %v4415_v38  ;;  %v2164_v29 = vld [vmem:[#allocation8 + $0x930] sm:$0xff] }
 0x4eb   : > { %4418 = vmatprep.subr.bf16.mxu0 %v4417_v4  ;;  %v4349_v33 = vpack.c.bf16 %v2165_v32, %v2164_v29  ;;  %v2168_v3 = vld [vmem:[#allocation8 + $0x950] sm:$0xff]  ;;  %v2170_v4 = vld [vmem:[#allocation8 + $0x960] sm:$0xff] }
 0x4ec   : > { %4280 = vmatpush3.bf16.msra.mxu1 %v4277_v59  ;;  %v4309_v59 = vpack.c.bf16 %v2065_v58, %v2064_v57  ;;  %v4357_v38 = vpack.c.bf16 %v2169_v37, %v2168_v3  ;;  %v4361_v40 = vpack.c.bf16 %v2171_v39, %v2170_v4  ;;  %v2251_v55 = vld [vmem:[#allocation2 + $0x4] sm:$0xff]  ;;  %v2261_v58 = vld [vmem:[#allocation8 + $0x9b8] sm:$0xff] }
 0x4ed   : > { %4282 = vmatprep.subr.bf16.mxu1 %v4281_v8  ;;  %v2260_v57 = vld [vmem:[#allocation8 + $0x9b0] sm:$0xff] }
 0x4ee   : > { %4420 = vmatpush1.bf16.msra.mxu0 %v4419_v46  ;;  %v4369_v46 = vpack.c.bf16 %v2255_v45, %v2254_v44  ;;  %v2389_v26 = vld [vmem:[#allocation11 + $0xf0] sm:$0xff] }
 0x4ef   : > { %4422 = vmatprep.subr.bf16.mxu0 %v4421_v47  ;;  %v2256_v47 = vld [vmem:[#allocation8 + $0x990] sm:$0xff] }
 0x4f0   : > { %4284 = vmatpush3.bf16.msra.mxu1 %v4281_v8  ;;  %v2072_v8 = vld [vmem:[#allocation8 + $0x8d0] sm:$0xff] }
 0x4f1   : > { %4286 = vmatprep.subr.bf16.mxu1 %v4285_v23  ;;  %v4325_v21 = vpack.c.bf16 %v2073_v9, %v2072_v8  ;;  %v2269_v8 = vld [vmem:[#allocation8 + $0x9f8] sm:$0xff] }
 0x4f4   : > { %4288 = vmatpush3.bf16.msra.mxu1 %v4285_v23  ;;  %v2161_v23 = vld [vmem:[#allocation8 + $0x918] sm:$0xff] }
 0x4f5   : > { %4290 = vmatprep.subr.bf16.mxu1 %v4289_v34  ;;  %v4341_v24 = vpack.c.bf16 %v2161_v23, %v2160_v22  ;;  %v2388_v22 = vld [vmem:[#allocation11 + $0xe8] sm:$0xff]  ;;  %v2390_v23 = vld [vmem:[#allocation11 + $0xf8] sm:$0xff] }
 0x4f8   : > { %4292 = vmatpush3.bf16.msra.mxu1 %v4289_v34  ;;  %v2166_v34 = vld [vmem:[#allocation8 + $0x940] sm:$0xff] }
 0x4f9   : > { %4294 = vmatprep.subr.bf16.mxu1 %v4293_v41  ;;  %v4353_v36 = vpack.c.bf16 %v2167_v35, %v2166_v34 }
 0x4fc   : > { %4296 = vmatpush3.bf16.msra.mxu1 %v4293_v41  ;;  %v2172_v41 = vld [vmem:[#allocation8 + $0x970] sm:$0xff] }
 0x4fd   : > { %4298 = vmatprep.subr.bf16.mxu1 %v4297_v48  ;;  %v4365_v43 = vpack.c.bf16 %v2173_v42, %v2172_v41 }
 0x500   : > { %4300 = vmatpush3.bf16.msra.mxu1 %v4297_v48  ;;  %v2257_v48 = vld [vmem:[#allocation8 + $0x998] sm:$0xff] }
 0x501   : > { %4302 = vmatprep.subr.bf16.mxu1 %v4301_v51  ;;  %v4373_v49 = vpack.c.bf16 %v2257_v48, %v2256_v47 }
 0x504   : > { %4304 = vmatpush3.bf16.msra.mxu1 %v4301_v51  ;;  %v2258_v51 = vld [vmem:[#allocation8 + $0x9a0] sm:$0xff] }
 0x505   : > { %4306 = vmatprep.subr.bf16.mxu1 %v4305_v56 }
 0x507   : > { %3654 = vmatmul.mubr.f32.vlgmr.msra.gmra.mrb[4].mxu1 %v1964_v30  ;;  %v2262_v30 = vld [vmem:[#allocation8 + $0x9c0] sm:$0xff] }
 0x508   : > { %4308 = vmatpush3.bf16.msra.mxu1 %v4305_v56  ;;  %3688 = vmatprep.mubr.f32.mxu1 %v5198_v54  ;;  %v4377_v56 = vpack.c.bf16 %v2259_v52, %v2258_v51  ;;  %v4385_v61 = vpack.c.bf16 %v2263_v60, %v2262_v30 }
 0x509   : > { %4310 = vmatprep.subr.bf16.mxu1 %v4309_v59 }
 0x50c   : > { %4312 = vmatpush3.bf16.msra.mxu1 %v4309_v59  ;;  %v4381_v59 = vpack.c.bf16 %v2261_v58, %v2260_v57 }
 0x50d   : > { %4314 = vmatprep.subr.bf16.mxu1 %v4313_v31 }
 0x510   : > { %4316 = vmatpush3.bf16.msra.mxu1 %v4313_v31  ;;  %v2264_v31 = vld [vmem:[#allocation8 + $0x9d0] sm:$0xff] }
 0x511   : > { %4318 = vmatprep.subr.bf16.mxu1 %v4317_v0  ;;  %v4389_v63 = vpack.c.bf16 %v2265_v62, %v2264_v31 }
 0x514   : > { %4320 = vmatpush3.bf16.msra.mxu1 %v4317_v0  ;;  %v2266_v0 = vld [vmem:[#allocation8 + $0x9e0] sm:$0xff] }
 0x515   : > { %4322 = vmatprep.subr.bf16.mxu1 %v4321_v7  ;;  %v4393_v6 = vpack.c.bf16 %v2267_v5, %v2266_v0 }
 0x518   : > { %4324 = vmatpush3.bf16.msra.mxu1 %v4321_v7  ;;  %v2268_v7 = vld [vmem:[#allocation8 + $0x9f0] sm:$0xff] }
 0x519   : > { %4326 = vmatprep.subr.bf16.mxu1 %v4325_v21  ;;  %v4397_v9 = vpack.c.bf16 %v2269_v8, %v2268_v7 }
 0x51c   : > { %4328 = vmatpush3.bf16.msra.mxu1 %v4325_v21  ;;  %v2252_v21 = vld [vmem:[#allocation2 + $0xc] sm:$0xff] }
 0x51d   : > { %4330 = vmatprep.subr.bf16.mxu1 %v4329_v19 }
 0x520   : > { %4332 = vmatpush3.bf16.msra.mxu1 %v4329_v19  ;;  %v4423_v19 = vpack.c.bf16 %v2381_v11, %v2379_v10 }
 0x521   : > { %4334 = vmatprep.subr.bf16.mxu1 %v4333_v16 }
 0x522   : > { %4424 = vmatpush1.bf16.msra.mxu0 %v4423_v19 }
 0x524   : > { %4336 = vmatpush3.bf16.msra.mxu1 %v4333_v16  ;;  %v4425_v16 = vpack.c.bf16 %v2386_v15, %v2384_v12 }
 0x525   : > { %4338 = vmatprep.subr.bf16.mxu1 %v4337_v20 }
 0x526   : > { %4426 = vmatprep.subr.bf16.mxu0 %v4425_v16 }
 0x527   : > { %3689 = vmatmul.mubr.f32.vlgmr.msra.gmra.mrb[4].mxu1 %v5195_v53 }
 0x528   : > { %4340 = vmatpush3.bf16.msra.mxu1 %v4337_v20  ;;  %3723 = vmatprep.mubr.f32.mxu1 %v2155_v27  ;;  %v4427_v20 = vpack.c.bf16 %v2385_v18, %v2383_v17  ;;  %v4431_v27 = vpack.c.bf16 %v2389_v26, %v2387_v25 }
 0x529   : > { %4342 = vmatprep.subr.bf16.mxu1 %v4341_v24 }
 0x52a   : > { %4428 = vmatpush1.bf16.msra.mxu0 %v4427_v20 }
 0x52c   : > { %4344 = vmatpush3.bf16.msra.mxu1 %v4341_v24  ;;  %v4429_v24 = vpack.c.bf16 %v2390_v23, %v2388_v22 }
 0x52d   : > { %4346 = vmatprep.subr.bf16.mxu1 %v4345_v28 }
 0x52e   : > { %4430 = vmatprep.subr.bf16.mxu0 %v4429_v24 }
 0x52f   : > { %4432 = vmatpush1.bf16.msra.mxu0 %v4431_v27 }
 0x530   : > { %4348 = vmatpush3.bf16.msra.mxu1 %v4345_v28  ;;  %v2689_v28 = vld [vmem:[#allocation10 + $0x3] ss:$0 sm:$0xff] }
 0x531   : > { %4350 = vmatprep.subr.bf16.mxu1 %v4349_v33 }
 0x534   : > { %4352 = vmatpush3.bf16.msra.mxu1 %v4349_v33 }
 0x535   : > { %4354 = vmatprep.subr.bf16.mxu1 %v4353_v36 }
 0x538   : > { %4356 = vmatpush3.bf16.msra.mxu1 %v4353_v36 }
 0x539   : > { %4358 = vmatprep.subr.bf16.mxu1 %v4357_v38 }
 0x53c   : > { %4360 = vmatpush3.bf16.msra.mxu1 %v4357_v38 }
 0x53d   : > { %4362 = vmatprep.subr.bf16.mxu1 %v4361_v40 }
 0x540   : > { %4364 = vmatpush3.bf16.msra.mxu1 %v4361_v40 }
 0x541   : > { %4366 = vmatprep.subr.bf16.mxu1 %v4365_v43 }
 0x544   : > { %4368 = vmatpush3.bf16.msra.mxu1 %v4365_v43 }
 0x545   : > { %4370 = vmatprep.subr.bf16.mxu1 %v4369_v46 }
 0x547   : > { %3724 = vmatmul.mubr.f32.vlgmr.msra.gmra.mrb[4].mxu1 %v2156_v50 }
 0x548   : > { %4372 = vmatpush3.bf16.msra.mxu1 %v4369_v46  ;;  %3758 = vmatprep.mubr.f32.mxu1 %v2251_v55 }
 0x549   : > { %4374 = vmatprep.subr.bf16.mxu1 %v4373_v49 }
 0x54c   : > { %4376 = vmatpush3.bf16.msra.mxu1 %v4373_v49 }
 0x54d   : > { %4378 = vmatprep.subr.bf16.mxu1 %v4377_v56 }
 0x550   : > { %4380 = vmatpush3.bf16.msra.mxu1 %v4377_v56 }
 0x551   : > { %4382 = vmatprep.subr.bf16.mxu1 %v4381_v59 }
 0x554   : > { %4384 = vmatpush3.bf16.msra.mxu1 %v4381_v59 }
 0x555   : > { %4386 = vmatprep.subr.bf16.mxu1 %v4385_v61 }
 0x558   : > { %4388 = vmatpush3.bf16.msra.mxu1 %v4385_v61 }
 0x559   : > { %4390 = vmatprep.subr.bf16.mxu1 %v4389_v63 }
 0x55c   : > { %4392 = vmatpush3.bf16.msra.mxu1 %v4389_v63 }
 0x55d   : > { %4394 = vmatprep.subr.bf16.mxu1 %v4393_v6 }
 0x560   : > { %4396 = vmatpush3.bf16.msra.mxu1 %v4393_v6 }
 0x561   : > { %4398 = vmatprep.subr.bf16.mxu1 %v4397_v9 }
 0x564   : > { %4400 = vmatpush3.bf16.msra.mxu1 %v4397_v9 }
 0x567   : > { %3759 = vmatmul.mubr.f32.vlgmr.msra.gmra.mrb[4].mxu1 %v2252_v21 }
 0x63a   : > { %v3760_v29 = vpop.f32.mrb[4].mxu1 }
 0x63b   : > { %v4441_v32 = vadd.f32 %v3760_v29, %v2689_v28  ;;  %v2336_v33 = vpop.f32.mrb[5].mxu1 }
 0x63c   : > { %v4442_v34 = vadd.f32 %v2689_v28, %v2336_v33 }
 0x63d   : > { %vm2348_vm8 = vcmp.gt.f32.partialorder %v4441_v32, 0.0  ;;  %v2350_v35 = vmul.f32 0.1, %v4441_v32 }
 0x63e   : > { %vm2347_vm9 = vcmp.gt.f32.partialorder %v4442_v34, 0.0  ;;  %v2349_v36 = vmul.f32 0.1, %v4442_v34 }
 0x63f   : > { %v2352_v3 = vsel %vm2348_vm8, %v4441_v32, %v2350_v35 }
 0x640   : > { %v2351_v37 = vsel %vm2347_vm9, %v4442_v34, %v2349_v36  ;;  %v2354_v38 = vadd.f32 %v2352_v3, %v5195_v53 }
 0x641   : > { %v2353_v4 = vadd.f32 %v2351_v37, %v5198_v54 }
 0x642   : > { %v2356_v39 = vmul.f32 %v5153_v14, %v2354_v38 }
 0x643   : > { %v2355_v40 = vmul.f32 %v5150_v13, %v2353_v4 }
 0x644   : > { %2358 = vst [vmem:[%s334_s16 + $0x8] sm:$0xff] %v2356_v39 }
 0x645   : > { %2468 = vmatmul.mubr.f32.vlgmr.msra.gmra.mrb[4].mxu0 %v2355_v40  ;;  %2357 = vst [vmem:[%s334_s16] sm:$0xff] %v2355_v40 }
 0x646   : > { %2473 = vmatprep.mubr.f32.mxu0 %v4849_v1 }
 0x649   : > { %2474 = vmatmul.mubr.f32.gmra.mrb[6].mxu0 %v2356_v39 }
 0x64a   : > { %4741 = shalt.err (!%p4738_p2)
}
 0x64b   : > { %s4742_s8 = scalar_lea.hbm %s5217_s9, 256  ;;  %s4746_s27 = scalar_lea.hbm %s5306_s6, 512 }
 0x64c   : > { %p4743_p12 = scmp.ne.s32.totalorder %s5217_s9, %s4742_s8  ;;  %p4747_p9 = scmp.lt.u32.totalorder %s5217_s9, %s5306_s6 }
 0x64d   : > { %p4748_p7 = scmp.lt.u32.totalorder %s4746_s27, %s4742_s8  ;;  %p4750_p13 = scmp.lt.u32.totalorder %s4742_s8, %s5217_s9 }
 0x64e   : > { %p4744_p3 = pnand %p4743_p12, %p5071_p8 }
 0x64f   : > { %p4749_p11 = por %p4748_p7, %p4747_p9 }
 0x650   : > { %p4745_p0 = pneg %p4744_p3 }
 0x651   : > { %p4751_p6 = por %p4750_p13, %p4749_p11 }
 0x653   : > { %p4752_p10 = pnand %p4751_p6, %p4745_p0 }
 0x655   : > { %4755 = shalt.err (!%p4752_p10)
}
 0x656   : > { %s4851_s25 = smov 128   ;;  %s4852_s30 = smov 8   ;;  %v2395_v1 = vsub.s32 0, %v5145_v2  ;;  %v2391_v53 = vld [vmem:[#allocation13] sm:$0x3]  ;;  %v2399_v54 = vsub.s32 1, %v5145_v2 }
 0x657   : > { %4491 = dma.vmem_to_hbm [thread:$0]  (%p5071_p8), %s5211_s22, 256, %s5217_s9, %s2489_s15, %s4851_s25, %s4851_s25, %s4852_s30  }
 0x658   : > { %v2396_v41 = vrot.slane %v2391_v53, %v2395_v1  ;;  %v2400_v42 = vrot.slane %v2391_v53, %v2399_v54  ;;  %s2683_s21 = sshll.u32 %s5122_s19, 5  ;;  %s2700_s22 = sshll.u32 %s4929_s0, 9 }
 0x659   : > { %s341_s28 = scalar_lea.vmem [#allocation15], %s2683_s21  ;;  %s5255_s17 = scalar_lea.hbm %s5307_s7, %s2700_s22 }
 0x65a   : > { %s2523_s2 = sshll.u32 %s341_s28, 4  ;;  %s2494_s0 = scalar_lea.sflag [#allocation16], %s5122_s19  ;;  %s5249_s2 = int_to_ptr.vmem [resolvable:$true] %s2523_s2 }
 0x65b   : > { %s4756_s24 = scalar_lea.vmem %s5249_s2, 512  ;;  %s4853_s8 = smov [#allocation15]  }
 0x65c   : > { %p4757_p1 = scmp.ne.s32.totalorder %s5249_s2, %s4756_s24  ;;  %s4760_s26 = sshll.u32 %s4853_s8, 4  ;;  %s4761_s26 = int_to_ptr.vmem [resolvable:$false] %s4760_s26 }
 0x65d   : > { %s4762_s20 = scalar_lea.vmem %s4761_s26, 1024  ;;  %p4763_p2 = scmp.lt.s32.totalorder %s5249_s2, %s4761_s26 }
 0x65e   : > { %p4758_p4 = pnand %p4757_p1, %p5071_p8  ;;  %p4764_p12 = scmp.lt.s32.totalorder %s4762_s20, %s4756_s24 }
 0x660   : > { %p4759_p5 = pneg %p4758_p4  ;;  %p4765_p3 = por %p4764_p12, %p4763_p2 }
 0x662   : > { %p4766_p0 = pnand %p4765_p3, %p4759_p5 }
 0x718   : > { %v2469_v43 = vpop.f32.mrb[4].mxu0 }
 0x719   : > { %v2470_v44 = vadd.f32 %v2469_v43, %v2396_v41  ;;  %v2471_v45 = vpop.f32.mrb[5].mxu0 }
 0x71a   : > { %v2472_v46 = vadd.f32 %v2471_v45, %v2400_v42 }
 0x71b   : > { %v2480_v47 = vmul.f32 %v5150_v13, %v2470_v44 }
 0x71c   : > { %v2481_v48 = vmul.f32 %v5150_v13, %v2472_v46  ;;  %v2475_v49 = vpop.f32.mrb[6].mxu0 }
 0x71d   : > { %2484 = vst [vmem:[%s341_s28] sm:$0xff] %v2480_v47  ;;  %v2476_v50 = vadd.f32 %v2475_v49, %v2396_v41  ;;  %v2477_v2 = vpop.f32.mrb[7].mxu0 }
 0x71e   : > { %2485 = vst [vmem:[%s341_s28 + $0x8] sm:$0xff] %v2481_v48  ;;  %v2478_v51 = vadd.f32 %v2477_v2, %v2400_v42 }
 0x71f   : > { %v2482_v52 = vmul.f32 %v5153_v14, %v2476_v50 }
 0x720   : > { %v2483_v13 = vmul.f32 %v5153_v14, %v2478_v51 }
 0x721   : > { %2486 = vst [vmem:[%s341_s28 + $0x10] sm:$0xff] %v2482_v52 }
 0x722   : > { %2487 = vst [vmem:[%s341_s28 + $0x18] sm:$0xff] %v2483_v13 }
 0x723   : > { %4769 = shalt.err (!%p4766_p0)
}
 0x724   : > { %s4770_s27 = scalar_lea.hbm %s5255_s17, 512  ;;  %s4774_s25 = scalar_lea.hbm %s5307_s7, 1024 }
 0x725   : > { %p4771_p9 = scmp.ne.s32.totalorder %s5255_s17, %s4770_s27  ;;  %p4775_p13 = scmp.lt.u32.totalorder %s5255_s17, %s5307_s7 }
 0x726   : > { %p4776_p6 = scmp.lt.u32.totalorder %s4774_s25, %s4770_s27  ;;  %p4778_p1 = scmp.lt.u32.totalorder %s4770_s27, %s5255_s17 }
 0x727   : > { %p4772_p7 = pnand %p4771_p9, %p5071_p8 }
 0x728   : > { %p4777_p10 = por %p4776_p6, %p4775_p13 }
 0x729   : > { %p4773_p11 = pneg %p4772_p7 }
 0x72a   : > { %p4779_p4 = por %p4778_p1, %p4777_p10 }
 0x72c   : > { %p4780_p5 = pnand %p4779_p4, %p4773_p11 }
 0x72e   : > { %4783 = shalt.err (!%p4780_p5)
}
 0x72f   : > { %s4854_s28 = smov 256   ;;  %s4855_s22 = smov 16  }
 0x730   : > { %4492 = dma.vmem_to_hbm [thread:$0]  (%p5071_p8), %s5249_s2, 512, %s5255_s17, %s2494_s0, %s4854_s28, %s4854_s28, %s4855_s22  }
 0x731 PF: > { %s5333_s9 = sld [smem:[#allocation23_spill]]  ;;  %s2538_s15 = sand.u32 1, %s4824_s11  }
 0x732   : > { %p5335_p12 = scmp.ge.s32.totalorder %s4836_s14, 2  ;;  %s2539_s24 = scalar_lea.sflag [#allocation7], %s2538_s15 }
 0x737   : > { %p5334_p2 = scmp.ne.s32.totalorder %s5333_s9, 0 }
 0x739   : > { %p4513_p3 = pnand %p5335_p12, %p5334_p2 }
 0x73b   : > { %4815 = dma.done.wait (!%p4513_p3), %s2539_s24, 256  }
 0x73c   : > { %4817 = vsyncadd (!%p4513_p3), %s2539_s24, 4294967040  ;;  %s2548_s8 = scalar_lea.sflag [#allocation16], %s2538_s15 }
 0x73d   : > { %4819 = dma.done.wait (!%p4513_p3), %s2548_s8, 512  }
 0x73e   : > { %4821 = vsyncadd (!%p4513_p3), %s2548_s8, 4294966784  ;;  %p30_p8 = scmp.ge.s32.totalorder %s5057_s29, 4   ;;  %s5336_s11 = smov %s4828_s12 }
 0x73f   : > { %s5337_s12 = smov %s4832_s13  ;;  %s5338_s13 = smov %s5067_s23 }
 0x740   : > { %s5339_s14 = smov %s5057_s29  ;;  %32 = sbr.rel (!%p30_p8) target bundleno = 21 (0x15), region = 140 }
 0x747   :  { %2553 = vsyncpa [#allocation6], 1 }
 0x748   :  { %2555 = vsyncpa [#allocation6 + $0x1], 1 }
 0x749   :  { %2556 = vsyncpa [#allocation9], 1 }
 0x74a   :  { %2557 = vsyncpa [#allocation12], 1 }
 0x74b   :  { %2558 = vsyncpa [#allocation7], 1 }
 0x74c   :  { %2560 = vsyncpa [#allocation7 + $0x1], 1 }
 0x74d   :  { %2561 = vsyncpa [#allocation16], 1 }
 0x74e   :  { %2563 = vsyncpa [#allocation16 + $0x1], 1 }

</bundles_post_ra>
